<compile_context>
chip_gen: v7x
topology: tpu7x:2x2x1
jax: 0.10.0
libtpu: 0.0.40
codegen_flags: <defaults>
</compile_context>

<pallas_src>
import functools

import jax
import jax.numpy as jnp
from jax.experimental import pallas as pl
from jax.experimental.pallas import tpu as pltpu

PROJ = 1  # proj_size=1, fixed by the module


def _rnn_kernel(x2d_ref, w_ih0_ref, w_rec_ref, w_cross_ref, b_ref, w_hr_last_ref,
                out_ref, xg_scr, h_scr, *,
                T, B_pad, D, hidden, num_layers, unroll):
    H = hidden
    G = 4 * H
    L = num_layers

    # ---- prologue: bulk layer-0 input->gates for all timesteps (+ layer-0 bias) ----
    w_ih0 = w_ih0_ref[...]                                   # (D, G)
    b0 = b_ref[0:1, :]                                       # (1, G)
    if D <= 8:
        # tiny contraction dim: a few VPU FMA passes beat a <4%-utilized MXU matmul
        xg = jnp.broadcast_to(b0, (T * B_pad, G))
        for k in range(D):
            xg = xg + x2d_ref[:, k:k + 1] * w_ih0[k:k + 1, :]
    else:
        xg = jnp.dot(x2d_ref[...], w_ih0, preferred_element_type=jnp.float32) + b0
    xg_scr[...] = xg

    # ---- hoist loop-invariant weights (no per-step re-load / re-broadcast) ----
    w_rec = [w_rec_ref[l] for l in range(L)]                 # (H, G) each
    w_cross = [w_cross_ref[l] for l in range(1, L)]          # (H, G), layers 1..L-1
    b_bcast = [jnp.broadcast_to(b_ref[l:l + 1, :], (B_pad, G)) for l in range(1, L)]

    def gate_nonlin(gates):
        if H % 128 == 0:
            # gate quarters are whole vregs -> run only the transcendental needed
            i_g = jax.nn.sigmoid(gates[:, 0 * H:1 * H])
            f_g = jax.nn.sigmoid(gates[:, 1 * H:2 * H])
            g_g = jnp.tanh(gates[:, 2 * H:3 * H])
            o_g = jax.nn.sigmoid(gates[:, 3 * H:4 * H])
        else:
            # sub-vreg quarters: one full-width pass each, then static lane selects
            sg = jax.nn.sigmoid(gates)
            th = jnp.tanh(gates)
            i_g, f_g, o_g = sg[:, 0:H], sg[:, H:2 * H], sg[:, 3 * H:4 * H]
            g_g = th[:, 2 * H:3 * H]
        return i_g, f_g, g_g, o_g

    def step(t, carry):
        hs, cs = carry                                       # un-projected h, c per layer
        row = pl.multiple_of(t * B_pad, 8)                   # aligned sublane slice
        xg_t = xg_scr[pl.ds(row, B_pad), :]                  # (B_pad, G)

        new_hs, new_cs = [], []
        for l in range(L):
            # rank-1-factored recurrent / cross-layer terms on the otherwise-idle MXU
            rec = jnp.dot(hs[l], w_rec[l], preferred_element_type=jnp.float32)
            if l == 0:
                gates = xg_t + rec                           # layer-0 bias folded into xg
            else:
                cross = jnp.dot(new_hs[l - 1], w_cross[l - 1],
                                preferred_element_type=jnp.float32)
                gates = cross + rec + b_bcast[l - 1]

            i_g, f_g, g_g, o_g = gate_nonlin(gates)
            c_new = f_g * cs[l] + i_g * g_g                  # (B_pad, H)
            h_new = o_g * jnp.tanh(c_new)                    # (B_pad, H), un-projected
            new_hs.append(h_new)
            new_cs.append(c_new)

        # stash last layer's hidden state; projection + sigmoid run in the epilogue
        h_scr[pl.ds(row, B_pad), :] = new_hs[-1]
        return tuple(new_hs), tuple(new_cs)

    h0 = tuple(jnp.zeros((B_pad, H), jnp.float32) for _ in range(L))
    c0 = tuple(jnp.zeros((B_pad, H), jnp.float32) for _ in range(L))
    jax.lax.fori_loop(0, T, step, (h0, c0), unroll=unroll)

    # ---- epilogue: bulk proj_size=1 projection + sigmoid, single block writeback ----
    proj = jnp.sum(h_scr[...] * w_hr_last_ref[...], axis=-1, keepdims=True)
    out_ref[...] = jax.nn.sigmoid(proj).astype(out_ref.dtype)


def rnn_forward(x, params, hidden):
    """Equivalent of RNN.forward for bidirectional=False: sigmoid(lstm(x)[0])."""
    # TODO(synk): bidirectional branch (Linear(2,1) over both directions) not implemented.
    # TODO(synk): inter-layer dropout skipped (inference semantics; no-op in eval).
    # TODO(synk): for long sequences / large hidden, add a T-chunk grid axis (h/c kept
    #             in VMEM scratch) so the gate buffer fits v7x's 64 MiB VMEM, and a
    #             batch-parallel leading axis to use v7x's second TensorCore.
    T, B, D = x.shape
    L = len(params)
    H = hidden
    G = 4 * H
    B_pad = max(8, ((B + 7) // 8) * 8)   # pad batch to full sublanes

    f32 = jnp.float32
    x_p = jnp.zeros((T, B_pad, D), f32).at[:, :B, :].set(x.astype(f32))
    x2d = x_p.reshape(T * B_pad, D)

    w_ih0_t = jnp.asarray(params[0]["w_ih"], f32).T                        # (D, G)
    w_hr = [jnp.asarray(p["w_hr"], f32).reshape(H, 1) for p in params]     # (H, 1)
    w_hh = [jnp.asarray(p["w_hh"], f32).reshape(1, G) for p in params]     # (1, G)
    # rank-1 factorizations of the proj_size=1 recurrent / cross-layer gate terms
    w_rec = jnp.stack([w_hr[l] * w_hh[l] for l in range(L)])               # (L, H, G)
    w_cross = jnp.stack(
        [jnp.zeros((H, G), f32)] +
        [w_hr[l - 1] * jnp.asarray(params[l]["w_ih"], f32).reshape(1, G)
         for l in range(1, L)])                                            # (L, H, G)
    b = jnp.stack([jnp.asarray(p["b_ih"], f32) + jnp.asarray(p["b_hh"], f32)
                   for p in params])                                       # (L, G)
    w_hr_last = jnp.asarray(params[-1]["w_hr"], f32).reshape(1, H)         # (1, H)

    # unroll gated on a vreg-pressure estimate (live gate/h/c tiles per layer-step)
    live_vregs = L * (B_pad // 8) * (pl.cdiv(G, 128) + 2 * pl.cdiv(H, 128))
    unroll = True if T * live_vregs <= 64 else max(1, min(8, 64 // max(live_vregs, 1)))

    kernel = functools.partial(_rnn_kernel, T=T, B_pad=B_pad, D=D,
                               hidden=H, num_layers=L, unroll=unroll)

    out = pl.pallas_call(
        kernel,
        out_shape=jax.ShapeDtypeStruct((T * B_pad, PROJ), f32),
        grid_spec=pltpu.PrefetchScalarGridSpec(
            num_scalar_prefetch=0,
            grid=(1,),
            in_specs=[
                pl.BlockSpec((T * B_pad, D), lambda i: (0, 0)),    # x (flat, padded)
                pl.BlockSpec((D, G), lambda i: (0, 0)),            # W_ih layer 0 (transposed)
                pl.BlockSpec((L, H, G), lambda i: (0, 0, 0)),      # W_rec = outer(w_hr, w_hh)
                pl.BlockSpec((L, H, G), lambda i: (0, 0, 0)),      # W_cross = outer(w_hr[l-1], w_ih[l])
                pl.BlockSpec((L, G), lambda i: (0, 0)),            # fused biases
                pl.BlockSpec((1, H), lambda i: (0, 0)),            # last-layer w_hr
            ],
            out_specs=pl.BlockSpec((T * B_pad, PROJ), lambda i: (0, 0)),
            scratch_shapes=[
                pltpu.VMEM((T * B_pad, G), f32),   # precomputed layer-0 gate contributions
                pltpu.VMEM((T * B_pad, H), f32),   # last-layer hidden states (pre-projection)
            ],
        ),
        compiler_params=pltpu.CompilerParams(
            dimension_semantics=("arbitrary",),
            vmem_limit_bytes=32 * 1024 * 1024),
    )(x2d, w_ih0_t, w_rec, w_cross, b, w_hr_last)

    return out.reshape(T, B_pad, PROJ)[:, :B, :]


def init_rnn_params(key, in_channels, hidden, num_layers):
    """Deterministic init mirroring nn.LSTM parameter shapes (proj_size=1)."""
    params = []
    k = 1.0 / float(hidden) ** 0.5
    for layer in range(num_layers):
        d_in = in_channels if layer == 0 else PROJ
        key, k0, k1, k2, k3, k4 = jax.random.split(key, 6)
        params.append(dict(
            w_ih=jax.random.uniform(k0, (4 * hidden, d_in), jnp.float32, -k, k),
            w_hh=jax.random.uniform(k1, (4 * hidden, PROJ), jnp.float32, -k, k),
            w_hr=jax.random.uniform(k2, (PROJ, hidden), jnp.float32, -k, k),
            b_ih=jax.random.uniform(k3, (4 * hidden,), jnp.float32, -k, k),
            b_hh=jax.random.uniform(k4, (4 * hidden,), jnp.float32, -k, k),
        ))
    return params


def rnn_reference(x, params, hidden):
    """Pure-JAX reference (lax.scan) for numerical verification."""
    h = x.astype(jnp.float32)
    for p in params:
        w_ih, w_hh, w_hr = p["w_ih"], p["w_hh"], p["w_hr"]
        bias = p["b_ih"] + p["b_hh"]
        B = h.shape[1]

        def step(carry, x_t, w_ih=w_ih, w_hh=w_hh, w_hr=w_hr, bias=bias):
            h_prev, c_prev = carry
            gates = x_t @ w_ih.T + h_prev @ w_hh.T + bias
            i = jax.nn.sigmoid(gates[:, :hidden])
            f = jax.nn.sigmoid(gates[:, hidden:2 * hidden])
            g = jnp.tanh(gates[:, 2 * hidden:3 * hidden])
            o = jax.nn.sigmoid(gates[:, 3 * hidden:])
            c = f * c_prev + i * g
            hh = (o * jnp.tanh(c)) @ w_hr.T
            return (hh, c), hh

        carry0 = (jnp.zeros((B, PROJ), jnp.float32),
                  jnp.zeros((B, hidden), jnp.float32))
        _, h = jax.lax.scan(step, carry0, h)
    return jax.nn.sigmoid(h)


if __name__ == "__main__":
    seq_len, batch = 8, 2
    in_channels, hidden_channels, num_layers = 4, 32, 2

    key = jax.random.PRNGKey(0)
    kx, kp = jax.random.split(key)
    x = jax.random.normal(kx, (seq_len, batch, in_channels), jnp.float32)
    params = init_rnn_params(kp, in_channels, hidden_channels, num_layers)

    out = jax.block_until_ready(rnn_forward(x, params, hidden_channels))
    ref = jax.block_until_ready(rnn_reference(x, params, hidden_channels))

    assert out.shape == (seq_len, batch, 1)
    assert jnp.allclose(out, ref, rtol=1e-4, atol=1e-5), "mismatch vs JAX reference"

    print("KERNEL_OK")
</pallas_src>

<mosaic_0001>
module attributes {stable_mosaic.version = 11 : i64} {
  func.func @_rnn_kernel(%arg0: i32, %arg1: memref<64x4xf32, #tpu.memory_space<vmem>>, %arg2: memref<4x128xf32, #tpu.memory_space<vmem>>, %arg3: memref<2x32x128xf32, #tpu.memory_space<vmem>>, %arg4: memref<2x32x128xf32, #tpu.memory_space<vmem>>, %arg5: memref<2x128xf32, #tpu.memory_space<vmem>>, %arg6: memref<1x32xf32, #tpu.memory_space<vmem>>, %arg7: memref<64x1xf32, #tpu.memory_space<vmem>>, %arg8: memref<64x128xf32, #tpu.memory_space<vmem>>, %arg9: memref<64x32xf32, #tpu.memory_space<vmem>>) attributes {dimension_semantics = [#tpu.dimension_semantics<arbitrary>], iteration_bounds = array<i64: 1>, scalar_prefetch = 0 : i64, scratch_operands = 2 : i64, tpu.core_type = #tpu.core_type<tc>, window_params = [{pipeline_mode = #tpu.pipeline_mode<synchronous>, transform_indices = @transform_0, window_bounds = array<i64: 64, 4>}, {pipeline_mode = #tpu.pipeline_mode<synchronous>, transform_indices = @transform_1, window_bounds = array<i64: 4, 128>}, {pipeline_mode = #tpu.pipeline_mode<synchronous>, transform_indices = @transform_2, window_bounds = array<i64: 2, 32, 128>}, {pipeline_mode = #tpu.pipeline_mode<synchronous>, transform_indices = @transform_3, window_bounds = array<i64: 2, 32, 128>}, {pipeline_mode = #tpu.pipeline_mode<synchronous>, transform_indices = @transform_4, window_bounds = array<i64: 2, 128>}, {pipeline_mode = #tpu.pipeline_mode<synchronous>, transform_indices = @transform_5, window_bounds = array<i64: 1, 32>}, {pipeline_mode = #tpu.pipeline_mode<synchronous>, transform_indices = @transform_6, window_bounds = array<i64: 64, 1>}]} {
    %c0 = arith.constant 0 : index
    %c0_0 = arith.constant 0 : index
    %0 = vector.load %arg2[%c0, %c0_0] : memref<4x128xf32, #tpu.memory_space<vmem>>, vector<4x128xf32>
    %c0_1 = arith.constant 0 : index
    %c0_2 = arith.constant 0 : index
    %1 = vector.load %arg5[%c0_1, %c0_2] : memref<2x128xf32, #tpu.memory_space<vmem>>, vector<1x128xf32>
    %2 = vector.shape_cast %1 : vector<1x128xf32> to vector<1x128xf32>
    %3 = vector.broadcast %2 : vector<1x128xf32> to vector<64x128xf32>
    %c0_3 = arith.constant 0 : index
    %c0_4 = arith.constant 0 : index
    %4 = vector.load %arg1[%c0_3, %c0_4] : memref<64x4xf32, #tpu.memory_space<vmem>>, vector<64x1xf32>
    %5 = vector.extract_strided_slice %0 {offsets = [0, 0], sizes = [1, 128], strides = [1, 1]} : vector<4x128xf32> to vector<1x128xf32>
    %6 = vector.broadcast %4 : vector<64x1xf32> to vector<64x128xf32>
    %7 = vector.broadcast %5 : vector<1x128xf32> to vector<64x128xf32>
    %8 = arith.mulf %6, %7 : vector<64x128xf32>
    %9 = arith.addf %3, %8 : vector<64x128xf32>
    %c0_5 = arith.constant 0 : index
    %c1 = arith.constant 1 : index
    %10 = vector.load %arg1[%c0_5, %c1] : memref<64x4xf32, #tpu.memory_space<vmem>>, vector<64x1xf32>
    %11 = vector.extract_strided_slice %0 {offsets = [1, 0], sizes = [1, 128], strides = [1, 1]} : vector<4x128xf32> to vector<1x128xf32>
    %12 = vector.broadcast %10 : vector<64x1xf32> to vector<64x128xf32>
    %13 = vector.broadcast %11 : vector<1x128xf32> to vector<64x128xf32>
    %14 = arith.mulf %12, %13 : vector<64x128xf32>
    %15 = arith.addf %9, %14 : vector<64x128xf32>
    %c0_6 = arith.constant 0 : index
    %c2 = arith.constant 2 : index
    %16 = vector.load %arg1[%c0_6, %c2] : memref<64x4xf32, #tpu.memory_space<vmem>>, vector<64x1xf32>
    %17 = vector.extract_strided_slice %0 {offsets = [2, 0], sizes = [1, 128], strides = [1, 1]} : vector<4x128xf32> to vector<1x128xf32>
    %18 = vector.broadcast %16 : vector<64x1xf32> to vector<64x128xf32>
    %19 = vector.broadcast %17 : vector<1x128xf32> to vector<64x128xf32>
    %20 = arith.mulf %18, %19 : vector<64x128xf32>
    %21 = arith.addf %15, %20 : vector<64x128xf32>
    %c0_7 = arith.constant 0 : index
    %c3 = arith.constant 3 : index
    %22 = vector.load %arg1[%c0_7, %c3] : memref<64x4xf32, #tpu.memory_space<vmem>>, vector<64x1xf32>
    %23 = vector.extract_strided_slice %0 {offsets = [3, 0], sizes = [1, 128], strides = [1, 1]} : vector<4x128xf32> to vector<1x128xf32>
    %24 = vector.broadcast %22 : vector<64x1xf32> to vector<64x128xf32>
    %25 = vector.broadcast %23 : vector<1x128xf32> to vector<64x128xf32>
    %26 = arith.mulf %24, %25 : vector<64x128xf32>
    %27 = arith.addf %21, %26 : vector<64x128xf32>
    %c0_8 = arith.constant 0 : index
    %c0_9 = arith.constant 0 : index
    %28 = vector.load %arg8[%c0_8, %c0_9] : memref<64x128xf32, #tpu.memory_space<vmem>>, vector<64x128xf32>
    tpu.vector_store %arg8[%c0_8, %c0_9], %27 {strides = array<i32>} : memref<64x128xf32, #tpu.memory_space<vmem>>, vector<64x128xf32>,
    %c0_10 = arith.constant 0 : index
    %c0_11 = arith.constant 0 : index
    %c0_12 = arith.constant 0 : index
    %29 = vector.load %arg3[%c0_10, %c0_11, %c0_12] : memref<2x32x128xf32, #tpu.memory_space<vmem>>, vector<1x32x128xf32>
    %30 = vector.shape_cast %29 : vector<1x32x128xf32> to vector<32x128xf32>
    %c1_13 = arith.constant 1 : index
    %c0_14 = arith.constant 0 : index
    %c0_15 = arith.constant 0 : index
    %31 = vector.load %arg3[%c1_13, %c0_14, %c0_15] : memref<2x32x128xf32, #tpu.memory_space<vmem>>, vector<1x32x128xf32>
    %32 = vector.shape_cast %31 : vector<1x32x128xf32> to vector<32x128xf32>
    %c1_16 = arith.constant 1 : index
    %c0_17 = arith.constant 0 : index
    %c0_18 = arith.constant 0 : index
    %33 = vector.load %arg4[%c1_16, %c0_17, %c0_18] : memref<2x32x128xf32, #tpu.memory_space<vmem>>, vector<1x32x128xf32>
    %34 = vector.shape_cast %33 : vector<1x32x128xf32> to vector<32x128xf32>
    %c1_19 = arith.constant 1 : index
    %c0_20 = arith.constant 0 : index
    %35 = vector.load %arg5[%c1_19, %c0_20] : memref<2x128xf32, #tpu.memory_space<vmem>>, vector<1x128xf32>
    %36 = vector.shape_cast %35 : vector<1x128xf32> to vector<1x128xf32>
    %37 = vector.broadcast %36 : vector<1x128xf32> to vector<8x128xf32>
    %cst = arith.constant 0.000000e+00 : f32
    %38 = vector.broadcast %cst : f32 to vector<8x32xf32>
    %cst_21 = arith.constant 0.000000e+00 : f32
    %39 = vector.broadcast %cst_21 : f32 to vector<8x32xf32>
    %cst_22 = arith.constant 0.000000e+00 : f32
    %40 = vector.broadcast %cst_22 : f32 to vector<8x32xf32>
    %cst_23 = arith.constant 0.000000e+00 : f32
    %41 = vector.broadcast %cst_23 : f32 to vector<8x32xf32>
    %c0_i32 = arith.constant 0 : i32
    %c8_i32 = arith.constant 8 : i32
    %42 = arith.muli %c0_i32, %c8_i32 : i32
    %43 = tpu.assume_multiple %42, 8 : i32
    %44 = arith.index_cast %43 : i32 to index
    %c0_24 = arith.constant 0 : index
    %45 = vector.load %arg8[%44, %c0_24] : memref<64x128xf32, #tpu.memory_space<vmem>>, vector<8x128xf32>
    %cst_25 = arith.constant dense<0.000000e+00> : vector<8x128xf32>
    %46 = tpu.matmul %38, %30, %cst_25 {dimension_numbers = #tpu.dot_dimension_numbers<[1], [0], [0], [1], [0, 0, 1, 1], [], []>} : vector<8x32xf32>, vector<32x128xf32>, vector<8x128xf32> -> vector<8x128xf32>
    %47 = arith.addf %45, %46 : vector<8x128xf32>
    %48 = arith.negf %47 : vector<8x128xf32>
    %49 = math.exp %48 : vector<8x128xf32>
    %cst_26 = arith.constant 1.000000e+00 : f32
    %50 = vector.broadcast %cst_26 : f32 to vector<8x128xf32>
    %51 = arith.addf %50, %49 : vector<8x128xf32>
    %52 = arith.divf %50, %51 : vector<8x128xf32>
    %53 = math.tanh %47 : vector<8x128xf32>
    %54 = vector.extract_strided_slice %52 {offsets = [0, 0], sizes = [8, 32], strides = [1, 1]} : vector<8x128xf32> to vector<8x32xf32>
    %55 = vector.extract_strided_slice %52 {offsets = [0, 32], sizes = [8, 32], strides = [1, 1]} : vector<8x128xf32> to vector<8x32xf32>
    %56 = vector.extract_strided_slice %52 {offsets = [0, 96], sizes = [8, 32], strides = [1, 1]} : vector<8x128xf32> to vector<8x32xf32>
    %57 = vector.extract_strided_slice %53 {offsets = [0, 64], sizes = [8, 32], strides = [1, 1]} : vector<8x128xf32> to vector<8x32xf32>
    %58 = arith.mulf %55, %40 : vector<8x32xf32>
    %59 = arith.mulf %54, %57 : vector<8x32xf32>
    %60 = arith.addf %58, %59 : vector<8x32xf32>
    %61 = math.tanh %60 : vector<8x32xf32>
    %62 = arith.mulf %56, %61 : vector<8x32xf32>
    %cst_27 = arith.constant dense<0.000000e+00> : vector<8x128xf32>
    %63 = tpu.matmul %39, %32, %cst_27 {dimension_numbers = #tpu.dot_dimension_numbers<[1], [0], [0], [1], [0, 0, 1, 1], [], []>} : vector<8x32xf32>, vector<32x128xf32>, vector<8x128xf32> -> vector<8x128xf32>
    %cst_28 = arith.constant dense<0.000000e+00> : vector<8x128xf32>
    %64 = tpu.matmul %62, %34, %cst_28 {dimension_numbers = #tpu.dot_dimension_numbers<[1], [0], [0], [1], [0, 0, 1, 1], [], []>} : vector<8x32xf32>, vector<32x128xf32>, vector<8x128xf32> -> vector<8x128xf32>
    %65 = arith.addf %64, %63 : vector<8x128xf32>
    %66 = arith.addf %65, %37 : vector<8x128xf32>
    %67 = arith.negf %66 : vector<8x128xf32>
    %68 = math.exp %67 : vector<8x128xf32>
    %cst_29 = arith.constant 1.000000e+00 : f32
    %69 = vector.broadcast %cst_29 : f32 to vector<8x128xf32>
    %70 = arith.addf %69, %68 : vector<8x128xf32>
    %71 = arith.divf %69, %70 : vector<8x128xf32>
    %72 = math.tanh %66 : vector<8x128xf32>
    %73 = vector.extract_strided_slice %71 {offsets = [0, 0], sizes = [8, 32], strides = [1, 1]} : vector<8x128xf32> to vector<8x32xf32>
    %74 = vector.extract_strided_slice %71 {offsets = [0, 32], sizes = [8, 32], strides = [1, 1]} : vector<8x128xf32> to vector<8x32xf32>
    %75 = vector.extract_strided_slice %71 {offsets = [0, 96], sizes = [8, 32], strides = [1, 1]} : vector<8x128xf32> to vector<8x32xf32>
    %76 = vector.extract_strided_slice %72 {offsets = [0, 64], sizes = [8, 32], strides = [1, 1]} : vector<8x128xf32> to vector<8x32xf32>
    %77 = arith.mulf %74, %41 : vector<8x32xf32>
    %78 = arith.mulf %73, %76 : vector<8x32xf32>
    %79 = arith.addf %77, %78 : vector<8x32xf32>
    %80 = math.tanh %79 : vector<8x32xf32>
    %81 = arith.mulf %75, %80 : vector<8x32xf32>
    %82 = arith.index_cast %43 : i32 to index
    %c0_30 = arith.constant 0 : index
    %83 = vector.load %arg9[%82, %c0_30] : memref<64x32xf32, #tpu.memory_space<vmem>>, vector<8x32xf32>
    tpu.vector_store %arg9[%82, %c0_30], %81 {strides = array<i32>} : memref<64x32xf32, #tpu.memory_space<vmem>>, vector<8x32xf32>,
    %c1_i32 = arith.constant 1 : i32
    %c8_i32_31 = arith.constant 8 : i32
    %84 = arith.muli %c1_i32, %c8_i32_31 : i32
    %85 = tpu.assume_multiple %84, 8 : i32
    %86 = arith.index_cast %85 : i32 to index
    %c0_32 = arith.constant 0 : index
    %87 = vector.load %arg8[%86, %c0_32] : memref<64x128xf32, #tpu.memory_space<vmem>>, vector<8x128xf32>
    %cst_33 = arith.constant dense<0.000000e+00> : vector<8x128xf32>
    %88 = tpu.matmul %62, %30, %cst_33 {dimension_numbers = #tpu.dot_dimension_numbers<[1], [0], [0], [1], [0, 0, 1, 1], [], []>} : vector<8x32xf32>, vector<32x128xf32>, vector<8x128xf32> -> vector<8x128xf32>
    %89 = arith.addf %87, %88 : vector<8x128xf32>
    %90 = arith.negf %89 : vector<8x128xf32>
    %91 = math.exp %90 : vector<8x128xf32>
    %cst_34 = arith.constant 1.000000e+00 : f32
    %92 = vector.broadcast %cst_34 : f32 to vector<8x128xf32>
    %93 = arith.addf %92, %91 : vector<8x128xf32>
    %94 = arith.divf %92, %93 : vector<8x128xf32>
    %95 = math.tanh %89 : vector<8x128xf32>
    %96 = vector.extract_strided_slice %94 {offsets = [0, 0], sizes = [8, 32], strides = [1, 1]} : vector<8x128xf32> to vector<8x32xf32>
    %97 = vector.extract_strided_slice %94 {offsets = [0, 32], sizes = [8, 32], strides = [1, 1]} : vector<8x128xf32> to vector<8x32xf32>
    %98 = vector.extract_strided_slice %94 {offsets = [0, 96], sizes = [8, 32], strides = [1, 1]} : vector<8x128xf32> to vector<8x32xf32>
    %99 = vector.extract_strided_slice %95 {offsets = [0, 64], sizes = [8, 32], strides = [1, 1]} : vector<8x128xf32> to vector<8x32xf32>
    %100 = arith.mulf %97, %60 : vector<8x32xf32>
    %101 = arith.mulf %96, %99 : vector<8x32xf32>
    %102 = arith.addf %100, %101 : vector<8x32xf32>
    %103 = math.tanh %102 : vector<8x32xf32>
    %104 = arith.mulf %98, %103 : vector<8x32xf32>
    %cst_35 = arith.constant dense<0.000000e+00> : vector<8x128xf32>
    %105 = tpu.matmul %81, %32, %cst_35 {dimension_numbers = #tpu.dot_dimension_numbers<[1], [0], [0], [1], [0, 0, 1, 1], [], []>} : vector<8x32xf32>, vector<32x128xf32>, vector<8x128xf32> -> vector<8x128xf32>
    %cst_36 = arith.constant dense<0.000000e+00> : vector<8x128xf32>
    %106 = tpu.matmul %104, %34, %cst_36 {dimension_numbers = #tpu.dot_dimension_numbers<[1], [0], [0], [1], [0, 0, 1, 1], [], []>} : vector<8x32xf32>, vector<32x128xf32>, vector<8x128xf32> -> vector<8x128xf32>
    %107 = arith.addf %106, %105 : vector<8x128xf32>
    %108 = arith.addf %107, %37 : vector<8x128xf32>
    %109 = arith.negf %108 : vector<8x128xf32>
    %110 = math.exp %109 : vector<8x128xf32>
    %cst_37 = arith.constant 1.000000e+00 : f32
    %111 = vector.broadcast %cst_37 : f32 to vector<8x128xf32>
    %112 = arith.addf %111, %110 : vector<8x128xf32>
    %113 = arith.divf %111, %112 : vector<8x128xf32>
    %114 = math.tanh %108 : vector<8x128xf32>
    %115 = vector.extract_strided_slice %113 {offsets = [0, 0], sizes = [8, 32], strides = [1, 1]} : vector<8x128xf32> to vector<8x32xf32>
    %116 = vector.extract_strided_slice %113 {offsets = [0, 32], sizes = [8, 32], strides = [1, 1]} : vector<8x128xf32> to vector<8x32xf32>
    %117 = vector.extract_strided_slice %113 {offsets = [0, 96], sizes = [8, 32], strides = [1, 1]} : vector<8x128xf32> to vector<8x32xf32>
    %118 = vector.extract_strided_slice %114 {offsets = [0, 64], sizes = [8, 32], strides = [1, 1]} : vector<8x128xf32> to vector<8x32xf32>
    %119 = arith.mulf %116, %79 : vector<8x32xf32>
    %120 = arith.mulf %115, %118 : vector<8x32xf32>
    %121 = arith.addf %119, %120 : vector<8x32xf32>
    %122 = math.tanh %121 : vector<8x32xf32>
    %123 = arith.mulf %117, %122 : vector<8x32xf32>
    %124 = arith.index_cast %85 : i32 to index
    %c0_38 = arith.constant 0 : index
    %125 = vector.load %arg9[%124, %c0_38] : memref<64x32xf32, #tpu.memory_space<vmem>>, vector<8x32xf32>
    tpu.vector_store %arg9[%124, %c0_38], %123 {strides = array<i32>} : memref<64x32xf32, #tpu.memory_space<vmem>>, vector<8x32xf32>,
    %c2_i32 = arith.constant 2 : i32
    %c8_i32_39 = arith.constant 8 : i32
    %126 = arith.muli %c2_i32, %c8_i32_39 : i32
    %127 = tpu.assume_multiple %126, 8 : i32
    %128 = arith.index_cast %127 : i32 to index
    %c0_40 = arith.constant 0 : index
    %129 = vector.load %arg8[%128, %c0_40] : memref<64x128xf32, #tpu.memory_space<vmem>>, vector<8x128xf32>
    %cst_41 = arith.constant dense<0.000000e+00> : vector<8x128xf32>
    %130 = tpu.matmul %104, %30, %cst_41 {dimension_numbers = #tpu.dot_dimension_numbers<[1], [0], [0], [1], [0, 0, 1, 1], [], []>} : vector<8x32xf32>, vector<32x128xf32>, vector<8x128xf32> -> vector<8x128xf32>
    %131 = arith.addf %129, %130 : vector<8x128xf32>
    %132 = arith.negf %131 : vector<8x128xf32>
    %133 = math.exp %132 : vector<8x128xf32>
    %cst_42 = arith.constant 1.000000e+00 : f32
    %134 = vector.broadcast %cst_42 : f32 to vector<8x128xf32>
    %135 = arith.addf %134, %133 : vector<8x128xf32>
    %136 = arith.divf %134, %135 : vector<8x128xf32>
    %137 = math.tanh %131 : vector<8x128xf32>
    %138 = vector.extract_strided_slice %136 {offsets = [0, 0], sizes = [8, 32], strides = [1, 1]} : vector<8x128xf32> to vector<8x32xf32>
    %139 = vector.extract_strided_slice %136 {offsets = [0, 32], sizes = [8, 32], strides = [1, 1]} : vector<8x128xf32> to vector<8x32xf32>
    %140 = vector.extract_strided_slice %136 {offsets = [0, 96], sizes = [8, 32], strides = [1, 1]} : vector<8x128xf32> to vector<8x32xf32>
    %141 = vector.extract_strided_slice %137 {offsets = [0, 64], sizes = [8, 32], strides = [1, 1]} : vector<8x128xf32> to vector<8x32xf32>
    %142 = arith.mulf %139, %102 : vector<8x32xf32>
    %143 = arith.mulf %138, %141 : vector<8x32xf32>
    %144 = arith.addf %142, %143 : vector<8x32xf32>
    %145 = math.tanh %144 : vector<8x32xf32>
    %146 = arith.mulf %140, %145 : vector<8x32xf32>
    %cst_43 = arith.constant dense<0.000000e+00> : vector<8x128xf32>
    %147 = tpu.matmul %123, %32, %cst_43 {dimension_numbers = #tpu.dot_dimension_numbers<[1], [0], [0], [1], [0, 0, 1, 1], [], []>} : vector<8x32xf32>, vector<32x128xf32>, vector<8x128xf32> -> vector<8x128xf32>
    %cst_44 = arith.constant dense<0.000000e+00> : vector<8x128xf32>
    %148 = tpu.matmul %146, %34, %cst_44 {dimension_numbers = #tpu.dot_dimension_numbers<[1], [0], [0], [1], [0, 0, 1, 1], [], []>} : vector<8x32xf32>, vector<32x128xf32>, vector<8x128xf32> -> vector<8x128xf32>
    %149 = arith.addf %148, %147 : vector<8x128xf32>
    %150 = arith.addf %149, %37 : vector<8x128xf32>
    %151 = arith.negf %150 : vector<8x128xf32>
    %152 = math.exp %151 : vector<8x128xf32>
    %cst_45 = arith.constant 1.000000e+00 : f32
    %153 = vector.broadcast %cst_45 : f32 to vector<8x128xf32>
    %154 = arith.addf %153, %152 : vector<8x128xf32>
    %155 = arith.divf %153, %154 : vector<8x128xf32>
    %156 = math.tanh %150 : vector<8x128xf32>
    %157 = vector.extract_strided_slice %155 {offsets = [0, 0], sizes = [8, 32], strides = [1, 1]} : vector<8x128xf32> to vector<8x32xf32>
    %158 = vector.extract_strided_slice %155 {offsets = [0, 32], sizes = [8, 32], strides = [1, 1]} : vector<8x128xf32> to vector<8x32xf32>
    %159 = vector.extract_strided_slice %155 {offsets = [0, 96], sizes = [8, 32], strides = [1, 1]} : vector<8x128xf32> to vector<8x32xf32>
    %160 = vector.extract_strided_slice %156 {offsets = [0, 64], sizes = [8, 32], strides = [1, 1]} : vector<8x128xf32> to vector<8x32xf32>
    %161 = arith.mulf %158, %121 : vector<8x32xf32>
    %162 = arith.mulf %157, %160 : vector<8x32xf32>
    %163 = arith.addf %161, %162 : vector<8x32xf32>
    %164 = math.tanh %163 : vector<8x32xf32>
    %165 = arith.mulf %159, %164 : vector<8x32xf32>
    %166 = arith.index_cast %127 : i32 to index
    %c0_46 = arith.constant 0 : index
    %167 = vector.load %arg9[%166, %c0_46] : memref<64x32xf32, #tpu.memory_space<vmem>>, vector<8x32xf32>
    tpu.vector_store %arg9[%166, %c0_46], %165 {strides = array<i32>} : memref<64x32xf32, #tpu.memory_space<vmem>>, vector<8x32xf32>,
    %c3_i32 = arith.constant 3 : i32
    %c8_i32_47 = arith.constant 8 : i32
    %168 = arith.muli %c3_i32, %c8_i32_47 : i32
    %169 = tpu.assume_multiple %168, 8 : i32
    %170 = arith.index_cast %169 : i32 to index
    %c0_48 = arith.constant 0 : index
    %171 = vector.load %arg8[%170, %c0_48] : memref<64x128xf32, #tpu.memory_space<vmem>>, vector<8x128xf32>
    %cst_49 = arith.constant dense<0.000000e+00> : vector<8x128xf32>
    %172 = tpu.matmul %146, %30, %cst_49 {dimension_numbers = #tpu.dot_dimension_numbers<[1], [0], [0], [1], [0, 0, 1, 1], [], []>} : vector<8x32xf32>, vector<32x128xf32>, vector<8x128xf32> -> vector<8x128xf32>
    %173 = arith.addf %171, %172 : vector<8x128xf32>
    %174 = arith.negf %173 : vector<8x128xf32>
    %175 = math.exp %174 : vector<8x128xf32>
    %cst_50 = arith.constant 1.000000e+00 : f32
    %176 = vector.broadcast %cst_50 : f32 to vector<8x128xf32>
    %177 = arith.addf %176, %175 : vector<8x128xf32>
    %178 = arith.divf %176, %177 : vector<8x128xf32>
    %179 = math.tanh %173 : vector<8x128xf32>
    %180 = vector.extract_strided_slice %178 {offsets = [0, 0], sizes = [8, 32], strides = [1, 1]} : vector<8x128xf32> to vector<8x32xf32>
    %181 = vector.extract_strided_slice %178 {offsets = [0, 32], sizes = [8, 32], strides = [1, 1]} : vector<8x128xf32> to vector<8x32xf32>
    %182 = vector.extract_strided_slice %178 {offsets = [0, 96], sizes = [8, 32], strides = [1, 1]} : vector<8x128xf32> to vector<8x32xf32>
    %183 = vector.extract_strided_slice %179 {offsets = [0, 64], sizes = [8, 32], strides = [1, 1]} : vector<8x128xf32> to vector<8x32xf32>
    %184 = arith.mulf %181, %144 : vector<8x32xf32>
    %185 = arith.mulf %180, %183 : vector<8x32xf32>
    %186 = arith.addf %184, %185 : vector<8x32xf32>
    %187 = math.tanh %186 : vector<8x32xf32>
    %188 = arith.mulf %182, %187 : vector<8x32xf32>
    %cst_51 = arith.constant dense<0.000000e+00> : vector<8x128xf32>
    %189 = tpu.matmul %165, %32, %cst_51 {dimension_numbers = #tpu.dot_dimension_numbers<[1], [0], [0], [1], [0, 0, 1, 1], [], []>} : vector<8x32xf32>, vector<32x128xf32>, vector<8x128xf32> -> vector<8x128xf32>
    %cst_52 = arith.constant dense<0.000000e+00> : vector<8x128xf32>
    %190 = tpu.matmul %188, %34, %cst_52 {dimension_numbers = #tpu.dot_dimension_numbers<[1], [0], [0], [1], [0, 0, 1, 1], [], []>} : vector<8x32xf32>, vector<32x128xf32>, vector<8x128xf32> -> vector<8x128xf32>
    %191 = arith.addf %190, %189 : vector<8x128xf32>
    %192 = arith.addf %191, %37 : vector<8x128xf32>
    %193 = arith.negf %192 : vector<8x128xf32>
    %194 = math.exp %193 : vector<8x128xf32>
    %cst_53 = arith.constant 1.000000e+00 : f32
    %195 = vector.broadcast %cst_53 : f32 to vector<8x128xf32>
    %196 = arith.addf %195, %194 : vector<8x128xf32>
    %197 = arith.divf %195, %196 : vector<8x128xf32>
    %198 = math.tanh %192 : vector<8x128xf32>
    %199 = vector.extract_strided_slice %197 {offsets = [0, 0], sizes = [8, 32], strides = [1, 1]} : vector<8x128xf32> to vector<8x32xf32>
    %200 = vector.extract_strided_slice %197 {offsets = [0, 32], sizes = [8, 32], strides = [1, 1]} : vector<8x128xf32> to vector<8x32xf32>
    %201 = vector.extract_strided_slice %197 {offsets = [0, 96], sizes = [8, 32], strides = [1, 1]} : vector<8x128xf32> to vector<8x32xf32>
    %202 = vector.extract_strided_slice %198 {offsets = [0, 64], sizes = [8, 32], strides = [1, 1]} : vector<8x128xf32> to vector<8x32xf32>
    %203 = arith.mulf %200, %163 : vector<8x32xf32>
    %204 = arith.mulf %199, %202 : vector<8x32xf32>
    %205 = arith.addf %203, %204 : vector<8x32xf32>
    %206 = math.tanh %205 : vector<8x32xf32>
    %207 = arith.mulf %201, %206 : vector<8x32xf32>
    %208 = arith.index_cast %169 : i32 to index
    %c0_54 = arith.constant 0 : index
    %209 = vector.load %arg9[%208, %c0_54] : memref<64x32xf32, #tpu.memory_space<vmem>>, vector<8x32xf32>
    tpu.vector_store %arg9[%208, %c0_54], %207 {strides = array<i32>} : memref<64x32xf32, #tpu.memory_space<vmem>>, vector<8x32xf32>,
    %c4_i32 = arith.constant 4 : i32
    %c8_i32_55 = arith.constant 8 : i32
    %210 = arith.muli %c4_i32, %c8_i32_55 : i32
    %211 = tpu.assume_multiple %210, 8 : i32
    %212 = arith.index_cast %211 : i32 to index
    %c0_56 = arith.constant 0 : index
    %213 = vector.load %arg8[%212, %c0_56] : memref<64x128xf32, #tpu.memory_space<vmem>>, vector<8x128xf32>
    %cst_57 = arith.constant dense<0.000000e+00> : vector<8x128xf32>
    %214 = tpu.matmul %188, %30, %cst_57 {dimension_numbers = #tpu.dot_dimension_numbers<[1], [0], [0], [1], [0, 0, 1, 1], [], []>} : vector<8x32xf32>, vector<32x128xf32>, vector<8x128xf32> -> vector<8x128xf32>
    %215 = arith.addf %213, %214 : vector<8x128xf32>
    %216 = arith.negf %215 : vector<8x128xf32>
    %217 = math.exp %216 : vector<8x128xf32>
    %cst_58 = arith.constant 1.000000e+00 : f32
    %218 = vector.broadcast %cst_58 : f32 to vector<8x128xf32>
    %219 = arith.addf %218, %217 : vector<8x128xf32>
    %220 = arith.divf %218, %219 : vector<8x128xf32>
    %221 = math.tanh %215 : vector<8x128xf32>
    %222 = vector.extract_strided_slice %220 {offsets = [0, 0], sizes = [8, 32], strides = [1, 1]} : vector<8x128xf32> to vector<8x32xf32>
    %223 = vector.extract_strided_slice %220 {offsets = [0, 32], sizes = [8, 32], strides = [1, 1]} : vector<8x128xf32> to vector<8x32xf32>
    %224 = vector.extract_strided_slice %220 {offsets = [0, 96], sizes = [8, 32], strides = [1, 1]} : vector<8x128xf32> to vector<8x32xf32>
    %225 = vector.extract_strided_slice %221 {offsets = [0, 64], sizes = [8, 32], strides = [1, 1]} : vector<8x128xf32> to vector<8x32xf32>
    %226 = arith.mulf %223, %186 : vector<8x32xf32>
    %227 = arith.mulf %222, %225 : vector<8x32xf32>
    %228 = arith.addf %226, %227 : vector<8x32xf32>
    %229 = math.tanh %228 : vector<8x32xf32>
    %230 = arith.mulf %224, %229 : vector<8x32xf32>
    %cst_59 = arith.constant dense<0.000000e+00> : vector<8x128xf32>
    %231 = tpu.matmul %207, %32, %cst_59 {dimension_numbers = #tpu.dot_dimension_numbers<[1], [0], [0], [1], [0, 0, 1, 1], [], []>} : vector<8x32xf32>, vector<32x128xf32>, vector<8x128xf32> -> vector<8x128xf32>
    %cst_60 = arith.constant dense<0.000000e+00> : vector<8x128xf32>
    %232 = tpu.matmul %230, %34, %cst_60 {dimension_numbers = #tpu.dot_dimension_numbers<[1], [0], [0], [1], [0, 0, 1, 1], [], []>} : vector<8x32xf32>, vector<32x128xf32>, vector<8x128xf32> -> vector<8x128xf32>
    %233 = arith.addf %232, %231 : vector<8x128xf32>
    %234 = arith.addf %233, %37 : vector<8x128xf32>
    %235 = arith.negf %234 : vector<8x128xf32>
    %236 = math.exp %235 : vector<8x128xf32>
    %cst_61 = arith.constant 1.000000e+00 : f32
    %237 = vector.broadcast %cst_61 : f32 to vector<8x128xf32>
    %238 = arith.addf %237, %236 : vector<8x128xf32>
    %239 = arith.divf %237, %238 : vector<8x128xf32>
    %240 = math.tanh %234 : vector<8x128xf32>
    %241 = vector.extract_strided_slice %239 {offsets = [0, 0], sizes = [8, 32], strides = [1, 1]} : vector<8x128xf32> to vector<8x32xf32>
    %242 = vector.extract_strided_slice %239 {offsets = [0, 32], sizes = [8, 32], strides = [1, 1]} : vector<8x128xf32> to vector<8x32xf32>
    %243 = vector.extract_strided_slice %239 {offsets = [0, 96], sizes = [8, 32], strides = [1, 1]} : vector<8x128xf32> to vector<8x32xf32>
    %244 = vector.extract_strided_slice %240 {offsets = [0, 64], sizes = [8, 32], strides = [1, 1]} : vector<8x128xf32> to vector<8x32xf32>
    %245 = arith.mulf %242, %205 : vector<8x32xf32>
    %246 = arith.mulf %241, %244 : vector<8x32xf32>
    %247 = arith.addf %245, %246 : vector<8x32xf32>
    %248 = math.tanh %247 : vector<8x32xf32>
    %249 = arith.mulf %243, %248 : vector<8x32xf32>
    %250 = arith.index_cast %211 : i32 to index
    %c0_62 = arith.constant 0 : index
    %251 = vector.load %arg9[%250, %c0_62] : memref<64x32xf32, #tpu.memory_space<vmem>>, vector<8x32xf32>
    tpu.vector_store %arg9[%250, %c0_62], %249 {strides = array<i32>} : memref<64x32xf32, #tpu.memory_space<vmem>>, vector<8x32xf32>,
    %c5_i32 = arith.constant 5 : i32
    %c8_i32_63 = arith.constant 8 : i32
    %252 = arith.muli %c5_i32, %c8_i32_63 : i32
    %253 = tpu.assume_multiple %252, 8 : i32
    %254 = arith.index_cast %253 : i32 to index
    %c0_64 = arith.constant 0 : index
    %255 = vector.load %arg8[%254, %c0_64] : memref<64x128xf32, #tpu.memory_space<vmem>>, vector<8x128xf32>
    %cst_65 = arith.constant dense<0.000000e+00> : vector<8x128xf32>
    %256 = tpu.matmul %230, %30, %cst_65 {dimension_numbers = #tpu.dot_dimension_numbers<[1], [0], [0], [1], [0, 0, 1, 1], [], []>} : vector<8x32xf32>, vector<32x128xf32>, vector<8x128xf32> -> vector<8x128xf32>
    %257 = arith.addf %255, %256 : vector<8x128xf32>
    %258 = arith.negf %257 : vector<8x128xf32>
    %259 = math.exp %258 : vector<8x128xf32>
    %cst_66 = arith.constant 1.000000e+00 : f32
    %260 = vector.broadcast %cst_66 : f32 to vector<8x128xf32>
    %261 = arith.addf %260, %259 : vector<8x128xf32>
    %262 = arith.divf %260, %261 : vector<8x128xf32>
    %263 = math.tanh %257 : vector<8x128xf32>
    %264 = vector.extract_strided_slice %262 {offsets = [0, 0], sizes = [8, 32], strides = [1, 1]} : vector<8x128xf32> to vector<8x32xf32>
    %265 = vector.extract_strided_slice %262 {offsets = [0, 32], sizes = [8, 32], strides = [1, 1]} : vector<8x128xf32> to vector<8x32xf32>
    %266 = vector.extract_strided_slice %262 {offsets = [0, 96], sizes = [8, 32], strides = [1, 1]} : vector<8x128xf32> to vector<8x32xf32>
    %267 = vector.extract_strided_slice %263 {offsets = [0, 64], sizes = [8, 32], strides = [1, 1]} : vector<8x128xf32> to vector<8x32xf32>
    %268 = arith.mulf %265, %228 : vector<8x32xf32>
    %269 = arith.mulf %264, %267 : vector<8x32xf32>
    %270 = arith.addf %268, %269 : vector<8x32xf32>
    %271 = math.tanh %270 : vector<8x32xf32>
    %272 = arith.mulf %266, %271 : vector<8x32xf32>
    %cst_67 = arith.constant dense<0.000000e+00> : vector<8x128xf32>
    %273 = tpu.matmul %249, %32, %cst_67 {dimension_numbers = #tpu.dot_dimension_numbers<[1], [0], [0], [1], [0, 0, 1, 1], [], []>} : vector<8x32xf32>, vector<32x128xf32>, vector<8x128xf32> -> vector<8x128xf32>
    %cst_68 = arith.constant dense<0.000000e+00> : vector<8x128xf32>
    %274 = tpu.matmul %272, %34, %cst_68 {dimension_numbers = #tpu.dot_dimension_numbers<[1], [0], [0], [1], [0, 0, 1, 1], [], []>} : vector<8x32xf32>, vector<32x128xf32>, vector<8x128xf32> -> vector<8x128xf32>
    %275 = arith.addf %274, %273 : vector<8x128xf32>
    %276 = arith.addf %275, %37 : vector<8x128xf32>
    %277 = arith.negf %276 : vector<8x128xf32>
    %278 = math.exp %277 : vector<8x128xf32>
    %cst_69 = arith.constant 1.000000e+00 : f32
    %279 = vector.broadcast %cst_69 : f32 to vector<8x128xf32>
    %280 = arith.addf %279, %278 : vector<8x128xf32>
    %281 = arith.divf %279, %280 : vector<8x128xf32>
    %282 = math.tanh %276 : vector<8x128xf32>
    %283 = vector.extract_strided_slice %281 {offsets = [0, 0], sizes = [8, 32], strides = [1, 1]} : vector<8x128xf32> to vector<8x32xf32>
    %284 = vector.extract_strided_slice %281 {offsets = [0, 32], sizes = [8, 32], strides = [1, 1]} : vector<8x128xf32> to vector<8x32xf32>
    %285 = vector.extract_strided_slice %281 {offsets = [0, 96], sizes = [8, 32], strides = [1, 1]} : vector<8x128xf32> to vector<8x32xf32>
    %286 = vector.extract_strided_slice %282 {offsets = [0, 64], sizes = [8, 32], strides = [1, 1]} : vector<8x128xf32> to vector<8x32xf32>
    %287 = arith.mulf %284, %247 : vector<8x32xf32>
    %288 = arith.mulf %283, %286 : vector<8x32xf32>
    %289 = arith.addf %287, %288 : vector<8x32xf32>
    %290 = math.tanh %289 : vector<8x32xf32>
    %291 = arith.mulf %285, %290 : vector<8x32xf32>
    %292 = arith.index_cast %253 : i32 to index
    %c0_70 = arith.constant 0 : index
    %293 = vector.load %arg9[%292, %c0_70] : memref<64x32xf32, #tpu.memory_space<vmem>>, vector<8x32xf32>
    tpu.vector_store %arg9[%292, %c0_70], %291 {strides = array<i32>} : memref<64x32xf32, #tpu.memory_space<vmem>>, vector<8x32xf32>,
    %c6_i32 = arith.constant 6 : i32
    %c8_i32_71 = arith.constant 8 : i32
    %294 = arith.muli %c6_i32, %c8_i32_71 : i32
    %295 = tpu.assume_multiple %294, 8 : i32
    %296 = arith.index_cast %295 : i32 to index
    %c0_72 = arith.constant 0 : index
    %297 = vector.load %arg8[%296, %c0_72] : memref<64x128xf32, #tpu.memory_space<vmem>>, vector<8x128xf32>
    %cst_73 = arith.constant dense<0.000000e+00> : vector<8x128xf32>
    %298 = tpu.matmul %272, %30, %cst_73 {dimension_numbers = #tpu.dot_dimension_numbers<[1], [0], [0], [1], [0, 0, 1, 1], [], []>} : vector<8x32xf32>, vector<32x128xf32>, vector<8x128xf32> -> vector<8x128xf32>
    %299 = arith.addf %297, %298 : vector<8x128xf32>
    %300 = arith.negf %299 : vector<8x128xf32>
    %301 = math.exp %300 : vector<8x128xf32>
    %cst_74 = arith.constant 1.000000e+00 : f32
    %302 = vector.broadcast %cst_74 : f32 to vector<8x128xf32>
    %303 = arith.addf %302, %301 : vector<8x128xf32>
    %304 = arith.divf %302, %303 : vector<8x128xf32>
    %305 = math.tanh %299 : vector<8x128xf32>
    %306 = vector.extract_strided_slice %304 {offsets = [0, 0], sizes = [8, 32], strides = [1, 1]} : vector<8x128xf32> to vector<8x32xf32>
    %307 = vector.extract_strided_slice %304 {offsets = [0, 32], sizes = [8, 32], strides = [1, 1]} : vector<8x128xf32> to vector<8x32xf32>
    %308 = vector.extract_strided_slice %304 {offsets = [0, 96], sizes = [8, 32], strides = [1, 1]} : vector<8x128xf32> to vector<8x32xf32>
    %309 = vector.extract_strided_slice %305 {offsets = [0, 64], sizes = [8, 32], strides = [1, 1]} : vector<8x128xf32> to vector<8x32xf32>
    %310 = arith.mulf %307, %270 : vector<8x32xf32>
    %311 = arith.mulf %306, %309 : vector<8x32xf32>
    %312 = arith.addf %310, %311 : vector<8x32xf32>
    %313 = math.tanh %312 : vector<8x32xf32>
    %314 = arith.mulf %308, %313 : vector<8x32xf32>
    %cst_75 = arith.constant dense<0.000000e+00> : vector<8x128xf32>
    %315 = tpu.matmul %291, %32, %cst_75 {dimension_numbers = #tpu.dot_dimension_numbers<[1], [0], [0], [1], [0, 0, 1, 1], [], []>} : vector<8x32xf32>, vector<32x128xf32>, vector<8x128xf32> -> vector<8x128xf32>
    %cst_76 = arith.constant dense<0.000000e+00> : vector<8x128xf32>
    %316 = tpu.matmul %314, %34, %cst_76 {dimension_numbers = #tpu.dot_dimension_numbers<[1], [0], [0], [1], [0, 0, 1, 1], [], []>} : vector<8x32xf32>, vector<32x128xf32>, vector<8x128xf32> -> vector<8x128xf32>
    %317 = arith.addf %316, %315 : vector<8x128xf32>
    %318 = arith.addf %317, %37 : vector<8x128xf32>
    %319 = arith.negf %318 : vector<8x128xf32>
    %320 = math.exp %319 : vector<8x128xf32>
    %cst_77 = arith.constant 1.000000e+00 : f32
    %321 = vector.broadcast %cst_77 : f32 to vector<8x128xf32>
    %322 = arith.addf %321, %320 : vector<8x128xf32>
    %323 = arith.divf %321, %322 : vector<8x128xf32>
    %324 = math.tanh %318 : vector<8x128xf32>
    %325 = vector.extract_strided_slice %323 {offsets = [0, 0], sizes = [8, 32], strides = [1, 1]} : vector<8x128xf32> to vector<8x32xf32>
    %326 = vector.extract_strided_slice %323 {offsets = [0, 32], sizes = [8, 32], strides = [1, 1]} : vector<8x128xf32> to vector<8x32xf32>
    %327 = vector.extract_strided_slice %323 {offsets = [0, 96], sizes = [8, 32], strides = [1, 1]} : vector<8x128xf32> to vector<8x32xf32>
    %328 = vector.extract_strided_slice %324 {offsets = [0, 64], sizes = [8, 32], strides = [1, 1]} : vector<8x128xf32> to vector<8x32xf32>
    %329 = arith.mulf %326, %289 : vector<8x32xf32>
    %330 = arith.mulf %325, %328 : vector<8x32xf32>
    %331 = arith.addf %329, %330 : vector<8x32xf32>
    %332 = math.tanh %331 : vector<8x32xf32>
    %333 = arith.mulf %327, %332 : vector<8x32xf32>
    %334 = arith.index_cast %295 : i32 to index
    %c0_78 = arith.constant 0 : index
    %335 = vector.load %arg9[%334, %c0_78] : memref<64x32xf32, #tpu.memory_space<vmem>>, vector<8x32xf32>
    tpu.vector_store %arg9[%334, %c0_78], %333 {strides = array<i32>} : memref<64x32xf32, #tpu.memory_space<vmem>>, vector<8x32xf32>,
    %c7_i32 = arith.constant 7 : i32
    %c8_i32_79 = arith.constant 8 : i32
    %336 = arith.muli %c7_i32, %c8_i32_79 : i32
    %337 = tpu.assume_multiple %336, 8 : i32
    %338 = arith.index_cast %337 : i32 to index
    %c0_80 = arith.constant 0 : index
    %339 = vector.load %arg8[%338, %c0_80] : memref<64x128xf32, #tpu.memory_space<vmem>>, vector<8x128xf32>
    %cst_81 = arith.constant dense<0.000000e+00> : vector<8x128xf32>
    %340 = tpu.matmul %314, %30, %cst_81 {dimension_numbers = #tpu.dot_dimension_numbers<[1], [0], [0], [1], [0, 0, 1, 1], [], []>} : vector<8x32xf32>, vector<32x128xf32>, vector<8x128xf32> -> vector<8x128xf32>
    %341 = arith.addf %339, %340 : vector<8x128xf32>
    %342 = arith.negf %341 : vector<8x128xf32>
    %343 = math.exp %342 : vector<8x128xf32>
    %cst_82 = arith.constant 1.000000e+00 : f32
    %344 = vector.broadcast %cst_82 : f32 to vector<8x128xf32>
    %345 = arith.addf %344, %343 : vector<8x128xf32>
    %346 = arith.divf %344, %345 : vector<8x128xf32>
    %347 = math.tanh %341 : vector<8x128xf32>
    %348 = vector.extract_strided_slice %346 {offsets = [0, 0], sizes = [8, 32], strides = [1, 1]} : vector<8x128xf32> to vector<8x32xf32>
    %349 = vector.extract_strided_slice %346 {offsets = [0, 32], sizes = [8, 32], strides = [1, 1]} : vector<8x128xf32> to vector<8x32xf32>
    %350 = vector.extract_strided_slice %346 {offsets = [0, 96], sizes = [8, 32], strides = [1, 1]} : vector<8x128xf32> to vector<8x32xf32>
    %351 = vector.extract_strided_slice %347 {offsets = [0, 64], sizes = [8, 32], strides = [1, 1]} : vector<8x128xf32> to vector<8x32xf32>
    %352 = arith.mulf %349, %312 : vector<8x32xf32>
    %353 = arith.mulf %348, %351 : vector<8x32xf32>
    %354 = arith.addf %352, %353 : vector<8x32xf32>
    %355 = math.tanh %354 : vector<8x32xf32>
    %356 = arith.mulf %350, %355 : vector<8x32xf32>
    %cst_83 = arith.constant dense<0.000000e+00> : vector<8x128xf32>
    %357 = tpu.matmul %333, %32, %cst_83 {dimension_numbers = #tpu.dot_dimension_numbers<[1], [0], [0], [1], [0, 0, 1, 1], [], []>} : vector<8x32xf32>, vector<32x128xf32>, vector<8x128xf32> -> vector<8x128xf32>
    %cst_84 = arith.constant dense<0.000000e+00> : vector<8x128xf32>
    %358 = tpu.matmul %356, %34, %cst_84 {dimension_numbers = #tpu.dot_dimension_numbers<[1], [0], [0], [1], [0, 0, 1, 1], [], []>} : vector<8x32xf32>, vector<32x128xf32>, vector<8x128xf32> -> vector<8x128xf32>
    %359 = arith.addf %358, %357 : vector<8x128xf32>
    %360 = arith.addf %359, %37 : vector<8x128xf32>
    %361 = arith.negf %360 : vector<8x128xf32>
    %362 = math.exp %361 : vector<8x128xf32>
    %cst_85 = arith.constant 1.000000e+00 : f32
    %363 = vector.broadcast %cst_85 : f32 to vector<8x128xf32>
    %364 = arith.addf %363, %362 : vector<8x128xf32>
    %365 = arith.divf %363, %364 : vector<8x128xf32>
    %366 = math.tanh %360 : vector<8x128xf32>
    %367 = vector.extract_strided_slice %365 {offsets = [0, 0], sizes = [8, 32], strides = [1, 1]} : vector<8x128xf32> to vector<8x32xf32>
    %368 = vector.extract_strided_slice %365 {offsets = [0, 32], sizes = [8, 32], strides = [1, 1]} : vector<8x128xf32> to vector<8x32xf32>
    %369 = vector.extract_strided_slice %365 {offsets = [0, 96], sizes = [8, 32], strides = [1, 1]} : vector<8x128xf32> to vector<8x32xf32>
    %370 = vector.extract_strided_slice %366 {offsets = [0, 64], sizes = [8, 32], strides = [1, 1]} : vector<8x128xf32> to vector<8x32xf32>
    %371 = arith.mulf %368, %331 : vector<8x32xf32>
    %372 = arith.mulf %367, %370 : vector<8x32xf32>
    %373 = arith.addf %371, %372 : vector<8x32xf32>
    %374 = math.tanh %373 : vector<8x32xf32>
    %375 = arith.mulf %369, %374 : vector<8x32xf32>
    %376 = arith.index_cast %337 : i32 to index
    %c0_86 = arith.constant 0 : index
    %377 = vector.load %arg9[%376, %c0_86] : memref<64x32xf32, #tpu.memory_space<vmem>>, vector<8x32xf32>
    tpu.vector_store %arg9[%376, %c0_86], %375 {strides = array<i32>} : memref<64x32xf32, #tpu.memory_space<vmem>>, vector<8x32xf32>,
    %c8_i32_87 = arith.constant 8 : i32
    %c0_88 = arith.constant 0 : index
    %c0_89 = arith.constant 0 : index
    %378 = vector.load %arg9[%c0_88, %c0_89] : memref<64x32xf32, #tpu.memory_space<vmem>>, vector<64x32xf32>
    %c0_90 = arith.constant 0 : index
    %c0_91 = arith.constant 0 : index
    %379 = vector.load %arg6[%c0_90, %c0_91] : memref<1x32xf32, #tpu.memory_space<vmem>>, vector<1x32xf32>
    %380 = vector.broadcast %379 : vector<1x32xf32> to vector<64x32xf32>
    %381 = arith.mulf %378, %380 : vector<64x32xf32>
    %cst_92 = arith.constant dense<0.000000e+00> : vector<64xf32>
    %382 = vector.multi_reduction <add>, %381, %cst_92 [1] : vector<64x32xf32> to vector<64xf32>
    %383 = vector.shape_cast %382 : vector<64xf32> to vector<64x1xf32>
    %384 = arith.negf %383 : vector<64x1xf32>
    %385 = math.exp %384 : vector<64x1xf32>
    %cst_93 = arith.constant 1.000000e+00 : f32
    %386 = vector.broadcast %cst_93 : f32 to vector<64x1xf32>
    %387 = arith.addf %386, %385 : vector<64x1xf32>
    %388 = arith.divf %386, %387 : vector<64x1xf32>
    %c0_94 = arith.constant 0 : index
    %c0_95 = arith.constant 0 : index
    %389 = vector.load %arg7[%c0_94, %c0_95] : memref<64x1xf32, #tpu.memory_space<vmem>>, vector<64x1xf32>
    tpu.vector_store %arg7[%c0_94, %c0_95], %388 {strides = array<i32>} : memref<64x1xf32, #tpu.memory_space<vmem>>, vector<64x1xf32>,
    return
  }
  func.func @transform_0(%arg0: i32) -> (i32, i32) {
    %c0_i32 = arith.constant 0 : i32
    %c0_i32_0 = arith.constant 0 : i32
    %c0_i32_1 = arith.constant 0 : i32
    return %c0_i32, %c0_i32_0 : i32, i32
  }
  func.func @transform_1(%arg0: i32) -> (i32, i32) {
    %c0_i32 = arith.constant 0 : i32
    %c0_i32_0 = arith.constant 0 : i32
    %c0_i32_1 = arith.constant 0 : i32
    return %c0_i32, %c0_i32_0 : i32, i32
  }
  func.func @transform_2(%arg0: i32) -> (i32, i32, i32) {
    %c0_i32 = arith.constant 0 : i32
    %c0_i32_0 = arith.constant 0 : i32
    %c0_i32_1 = arith.constant 0 : i32
    %c0_i32_2 = arith.constant 0 : i32
    return %c0_i32, %c0_i32_0, %c0_i32_1 : i32, i32, i32
  }
  func.func @transform_3(%arg0: i32) -> (i32, i32, i32) {
    %c0_i32 = arith.constant 0 : i32
    %c0_i32_0 = arith.constant 0 : i32
    %c0_i32_1 = arith.constant 0 : i32
    %c0_i32_2 = arith.constant 0 : i32
    return %c0_i32, %c0_i32_0, %c0_i32_1 : i32, i32, i32
  }
  func.func @transform_4(%arg0: i32) -> (i32, i32) {
    %c0_i32 = arith.constant 0 : i32
    %c0_i32_0 = arith.constant 0 : i32
    %c0_i32_1 = arith.constant 0 : i32
    return %c0_i32, %c0_i32_0 : i32, i32
  }
  func.func @transform_5(%arg0: i32) -> (i32, i32) {
    %c0_i32 = arith.constant 0 : i32
    %c0_i32_0 = arith.constant 0 : i32
    %c0_i32_1 = arith.constant 0 : i32
    return %c0_i32, %c0_i32_0 : i32, i32
  }
  func.func @transform_6(%arg0: i32) -> (i32, i32) {
    %c0_i32 = arith.constant 0 : i32
    %c0_i32_0 = arith.constant 0 : i32
    %c0_i32_1 = arith.constant 0 : i32
    return %c0_i32, %c0_i32_0 : i32, i32
  }
}

</mosaic_0001>

<bundles_post_ra>
// kernel: tpu_custom_call.1
= control target key start
LH: loop header
LB: loop body
LE: loop exit
PB: predicated region body
PF: predicated region fallthrough
CT: control target
= control target key end

     0   :  { %11 = vsyncpa [#allocation5], 0  ;;  %s3413_s21 = smov [#allocation4]   ;;  %s3983_s0 = inlined_call_operand.vmem [shape: f32[64,4], index: 0, kind: input, shape index: {}]   ;;  %s3984_s1 = inlined_call_operand.vmem [shape: f32[4,128], index: 1, kind: input, shape index: {}]   ;;  %s3985_s2 = inlined_call_operand.vmem [shape: f32[2,32,128], index: 2, kind: input, shape index: {}]   ;;  %s3986_s3 = inlined_call_operand.hbm [shape: f32[2,32,128], index: 3, kind: input, shape index: {}]   ;;  %s3987_s4 = inlined_call_operand.vmem [shape: f32[2,128], index: 4, kind: input, shape index: {}]   ;;  %s3988_s5 = inlined_call_operand.vmem [shape: f32[1,32], index: 5, kind: input, shape index: {}]   ;;  %s3989_s6 = inlined_call_operand.vmem [shape: f32[64,1], index: 6, kind: output, shape index: {}]  }
   0x1   :  { %s23_s22 = sshll.u32 %s3413_s21, 4  ;;  %s3389_s25 = scalar_lea.hbm %s3986_s3, 1024  ;;  %s24_s22 = int_to_ptr.vmem [resolvable:$true] %s23_s22 }
   0x2   :  { %p3390_p0 = scmp.ne.s32.totalorder %s3986_s3, %s3389_s25  ;;  %p3393_p1 = scmp.lt.u32.totalorder %s3389_s25, %s3986_s3 }
   0x4   :  { %p3395_p2 = pnand %p3393_p1, %p3390_p0 }
   0x6   :  { %3398 = shalt.err (!%p3395_p2)
}
   0x7   :  { %s3399_s30 = scalar_lea.vmem %s24_s22, 1024  ;;  %p3404_p4 = scmp.lt.s32.totalorder %s24_s22, %s24_s22 }
   0x8   :  { %p3400_p3 = scmp.ne.s32.totalorder %s24_s22, %s3399_s30  ;;  %p3405_p5 = scmp.lt.s32.totalorder %s3399_s30, %s3399_s30 }
   0xa   :  { %p3406_p6 = por %p3405_p5, %p3404_p4 }
   0xc   :  { %p3407_p7 = pnand %p3406_p6, %p3400_p3 }
   0xe   :  { %3410 = shalt.err (!%p3407_p7)
}
   0xf   :  { %s3414_s7 = smov 128   ;;  %s3415_s8 = smov 8  }
  0x10   :  { %29 = dma.hbm_to_vmem [thread:$0]  %s3986_s3, 1024, %s24_s22, [#allocation5], %s3414_s7, %s3414_s7, %s3415_s8  }
  0x11   :  { %3411 = dma.done.wait [#allocation5], 1024  }
  0x12   :  { %3412 = vsyncadd [#allocation5], 4294966272  ;;  %v3416_v0 = vmov 0.0|0.0   ;;  %vm3417_vm0 = vmmov 0   ;;  %v3418_v1 = vmov 0.0   ;;  %v3419_v2 = vmov 0  }
  0x13   :  { %3040 = vmatprep.subr.bf16.mxu0 %v3416_v0  ;;  %2784 = vmatprep.mubr.msk.f32.mxu0 %vm3417_vm0, %v3418_v1  ;;  %v3420_v3 = vmov 2   ;;  %v275_v4 = vld [vmem:[%s3985_s2] sm:$0xff]  ;;  %v276_v5 = vld [vmem:[%s3985_s2 + $0x8] sm:$0xff]  ;;  %v277_v6 = vld [vmem:[%s3985_s2 + $0x10] sm:$0xff]  ;;  %v3421_v11 = vmov 1   ;;  %v3422_v12 = vmov 3   ;;  %v91_v13 = vlaneseq }
  0x14   :  { %3196 = vset.pattern.permute.xlu0 %v3419_v2  ;;  %3198 = vset.pattern.permute.xlu1 %v3420_v3  ;;  %v3489_v7 = vpack.c.bf16 %v276_v5, %v275_v4  ;;  %v278_v8 = vld [vmem:[%s3985_s2 + $0x18] sm:$0xff]  ;;  %v43_v9 = vld [vmem:[%s3983_s0] sm:$0xff]  ;;  %s3424_s24 = smov 32   ;;  %v2605_v51 = vld [vmem:[%s3985_s2 + $0x28] sm:$0xff]  ;;  %vm295_vm1 = vcmask 261120   ;;  %vm2589_vm2 = vcmask 7168  }
  0x15   :  { %3046 = vmatprep.subr.bf16.mxu1 %v3416_v0  ;;  %2795 = vmatprep.mubr.msk.f32.mxu1 %vm3417_vm0, %v3418_v1  ;;  %v3498_v10 = vpack.c.bf16 %v278_v8, %v277_v6  ;;  %v92_v14 = vshrl.u32 %v91_v13, 7  ;;  %v37_v16 = vld [vmem:[%s3984_s1] sm:$0xf]  ;;  %s3423_s1 = smov 64   ;;  %v2606_v52 = vld [vmem:[%s3985_s2 + $0x30] sm:$0xff]  ;;  %v2607_v55 = vld [vmem:[%s3985_s2 + $0x38] sm:$0xff] }
  0x16   :  { %53 = vperm.xlu0 %3196, %v43_v9   ;;  %164 = vperm.xlu1 %3198, %v43_v9   ;;  %v3520_v23 = vld [vmem:[%s3987_s4] ss:$0 sm:$0xff]  ;;  %v286_v57 = vld [vmem:[#allocation4 + $0x28] sm:$0xff]  ;;  %v287_v59 = vld [vmem:[#allocation4 + $0x30] sm:$0xff]  ;;  %v3556_v62 = vpack.c.bf16 %v2607_v55, %v2606_v52 }
  0x17   :  { %3042 = vmatpush3.bf16.msra.mxu0 %v3489_v7  ;;  %v93_v15 = vsub.s32 0, %v92_v14  ;;  %v145_v19 = vsub.s32 1, %v92_v14  ;;  %v197_v21 = vsub.s32 2, %v92_v14  ;;  %v249_v29 = vsub.s32 3, %v92_v14  ;;  %v2604_v50 = vld [vmem:[%s3985_s2 + $0x20] sm:$0xff]  ;;  %v288_v60 = vld [vmem:[#allocation4 + $0x38] sm:$0xff] }
  0x18   :  { %3043 = vmatprep.subr.bf16.mxu0 %v3416_v0  ;;  %v3544_v54 = vpack.c.bf16 %v2605_v51, %v2604_v50  ;;  %v285_v56 = vld [vmem:[#allocation4 + $0x20] sm:$0xff]  ;;  %v44_v61 = vld [vmem:[%s3983_s0 + $0x8] sm:$0xff]  ;;  %v3560_v63 = vpack.c.bf16 %v288_v60, %v287_v59 }
  0x19   :  { %v3512_v18 = vrot.slane %v37_v16, %v93_v15  ;;  %v3515_v22 = vrot.slane %v37_v16, %v145_v19  ;;  %v3523_v27 = vrot.slane %v37_v16, %v197_v21  ;;  %v3527_v32 = vrot.slane %v37_v16, %v249_v29 }
  0x1a   :  { %3197 = vset.pattern.permute.xlu0 %v3421_v11  ;;  %3199 = vset.pattern.permute.xlu1 %v3422_v12  ;;  %v3550_v58 = vpack.c.bf16 %v286_v57, %v285_v56 }
  0x1b   :  { %3045 = vmatpush3.bf16.msra.mxu0 %v3498_v10  ;;  %112 = vperm.xlu0 %3197, %v43_v9  }
  0x1c   :  { %216 = vperm.xlu1 %3199, %v43_v9   ;;  %3052 = vmatprep.subr.bf16.mxu0 %v3416_v0 }
  0x1d   :  { %3048 = vmatpush3.bf16.msra.mxu1 %v3544_v54 }
  0x1e   :  { %2785 = vmatmul.mubr.f32.vlgmr.msra.gmra.mrb[0].mxu0 %v3418_v1  ;;  %3049 = vmatprep.subr.bf16.mxu1 %v3416_v0 }
  0x1f   :  { %2806 = vmatprep.mubr.msk.f32.mxu0 %vm3417_vm0, %v3418_v1  ;;  %3054 = vmatpush3.bf16.msra.mxu0 %v3550_v58 }
  0x20   :  { %3200 = vset.pattern.permute.xlu1 %v3419_v2  ;;  %3055 = vmatprep.subr.bf16.mxu0 %v3416_v0 }
  0x21   :  { %3051 = vmatpush3.bf16.msra.mxu1 %v3556_v62 }
  0x22   :  { %3058 = vmatprep.subr.bf16.mxu1 %v3416_v0 }
  0x23   :  { %3057 = vmatpush3.bf16.msra.mxu0 %v3560_v63 }
  0x24   :  { %3064 = vmatprep.subr.bf16.mxu0 %v3416_v0  ;;  %2796 = vmatmul.mubr.f32.vlgmr.msra.gmra.mrb[0].mxu1 %v3418_v1 }
  0x25   :  { %3060 = vmatpush3.bf16.msra.mxu1 %v3489_v7  ;;  %2817 = vmatprep.mubr.msk.f32.mxu1 %vm3417_vm0, %v3418_v1 }
  0x26   :  { %3061 = vmatprep.subr.bf16.mxu1 %v3416_v0 }
  0x29   :  { %3063 = vmatpush3.bf16.msra.mxu1 %v3498_v10 }
  0x2a   :  { %3070 = vmatprep.subr.bf16.mxu1 %v3416_v0 }
  0x95   :  { %v54_v17 = vpop.permute.xlu0 %53  ;;  %v165_v25 = vpop.permute.xlu1 %164 }
  0x96   :  { %v95_v20 = vmul.f32 %v3512_v18, %v54_v17  ;;  %v199_v30 = vmul.f32 %v3523_v27, %v165_v25 }
  0x98   :  { %v103_v26 = vadd.f32 %v3520_v23, %v95_v20 }
  0x9a   :  { %v113_v24 = vpop.permute.xlu0 %112 }
  0x9b   :  { %v147_v28 = vmul.f32 %v3515_v22, %v113_v24  ;;  %v217_v33 = vpop.permute.xlu1 %216 }
  0x9c   :  { %v251_v34 = vmul.f32 %v3527_v32, %v217_v33 }
  0x9d   :  { %v155_v31 = vadd.f32 %v147_v28, %v103_v26  ;;  %v3601_v28 = vld [vmem:[%s3987_s4 + $0x1] ss:$0 sm:$0xff] }
  0x9f   :  { %v207_v35 = vadd.f32 %v199_v30, %v155_v31 }
  0xa1   :  { %v259_v36 = vadd.f32 %v251_v34, %v207_v35 }
  0xf1   :  { %v365_v37 = vpop.f32.mrb[0].mxu0 }
  0xf2   :  { %v369_v38 = vadd.f32 %v365_v37, %v259_v36  ;;  %v2786_v39 = vpop.f32.mrb[1].mxu0 }
  0xf4   :  { %3227 = vtanh.f32 %v369_v38  ;;  %v2609_v41 = vmul.f32 -1.442695, %v369_v38 }
  0xf6   :  { %3229 = vpow2.f32 %v2609_v41 }
  0xf7   :  { %v460_v6 = vpop.f32.mrb[0].mxu1 }
  0xf8   :  { %v2797_v8 = vpop.f32.mrb[1].mxu1 }
  0xfe   :  { %v3228_v40 = vpop.eup %3227 }
  0xff   :  { %379 = vrot.lane.b32.xlu1 %v3228_v40, %s3423_s1 }
 0x100   :  { %v3230_v42 = vpop.eup %3229 }
 0x101   :  { %v373_v43 = vadd.f32 1.0, %v3230_v42 }
 0x103   :  { %3231 = vrcp.f32 %v373_v43 }
 0x10d   :  { %v3232_v44 = vpop.eup %3231 }
 0x10e   :  { %v377_v47 = vmul.f32 0.0, %v3232_v44 }
 0x171   :  { %v380_v45 = vpop.permute.xlu1 %379 }
 0x172   :  { %v382_v46 = vmul.f32 %v3232_v44, %v380_v45 }
 0x174   :  { %384 = vrot.lane.b32.xlu0 %v382_v46, %s3424_s24 }
 0x1e6   :  { %v385_v48 = vpop.permute.xlu0 %384 }
 0x1e7   :  { %v3532_v49 = vadd.f32 %v385_v48, %v377_v47 }
 0x1e9   :  { %3233 = vtanh.f32 %v3532_v49 }
 0x1f3   :  { %v3234_v53 = vpop.eup %3233 }
 0x1f4   :  { %390 = vrot.lane.b32.xlu1 %v3234_v53, %s3423_s1 }
 0x1f8   :  { %58 = vperm.xlu1 %3200, %v44_v61  }
 0x1fc   :  { %3201 = vset.pattern.permute.xlu1 %v3420_v3 }
 0x1fd   :  { %168 = vperm.xlu1 %3201, %v44_v61  }
 0x201   :  { %3204 = vset.pattern.permute.xlu1 %v3421_v11 }
 0x266   :  { %v391_v4 = vpop.permute.xlu1 %390 }
 0x267   :  { %v393_v5 = vmul.f32 %v3232_v44, %v391_v4 }
 0x269   :  { %465 = vrot.lane.b32.xlu0 %v393_v5, %s3424_s24 }
 0x26d   :  { %116 = vperm.xlu0 %3197, %v44_v61  }
 0x271   :  { %3202 = vset.pattern.permute.xlu0 %v3422_v12 }
 0x272   :  { %220 = vperm.xlu0 %3202, %v44_v61  }
 0x276   :  { %3203 = vset.pattern.permute.xlu0 %v3419_v2 }
 0x277   :  { %v59_v13 = vpop.permute.xlu1 %58 }
 0x278   :  { %v96_v14 = vmul.f32 %v3512_v18, %v59_v13 }
 0x27a   :  { %v104_v16 = vadd.f32 %v3520_v23, %v96_v14 }
 0x27c   :  { %v169_v19 = vpop.permute.xlu1 %168 }
 0x27d   :  { %v200_v21 = vmul.f32 %v3523_v27, %v169_v19 }
 0x2db   :  { %v466_v9 = vpop.permute.xlu0 %465 }
 0x2dc   :  { %2807 = vmatmul.mubr.msk.f32.vlgmr.msra.gmra.mrb[2].mxu0 %vm295_vm1, %v466_v9  ;;  %2818 = vmatmul.mubr.msk.f32.vlgmr.msra.gmra.mrb[2].mxu1 %vm295_vm1, %v466_v9 }
 0x2dd   :  { %3066 = vmatpush3.bf16.msra.mxu0 %v3544_v54  ;;  %3072 = vmatpush3.bf16.msra.mxu1 %v3550_v58 }
 0x2de   :  { %3067 = vmatprep.subr.bf16.mxu0 %v3416_v0  ;;  %2828 = vmatprep.mubr.msk.f32.mxu0 %vm3417_vm0, %v3418_v1 }
 0x2df   :  { %3073 = vmatprep.subr.bf16.mxu1 %v3416_v0  ;;  %2839 = vmatprep.mubr.msk.f32.mxu1 %vm3417_vm0, %v3418_v1 }
 0x2e1   :  { %3069 = vmatpush3.bf16.msra.mxu0 %v3556_v62  ;;  %3075 = vmatpush3.bf16.msra.mxu1 %v3560_v63 }
 0x2e2   :  { %3076 = vmatprep.subr.bf16.mxu0 %v3416_v0  ;;  %3082 = vmatprep.subr.bf16.mxu1 %v3416_v0 }
 0x2ec   :  { %v117_v15 = vpop.permute.xlu0 %116 }
 0x2ed   :  { %v148_v17 = vmul.f32 %v3515_v22, %v117_v15 }
 0x2ef   :  { %v156_v20 = vadd.f32 %v148_v17, %v104_v16 }
 0x2f1   :  { %v221_v24 = vpop.permute.xlu0 %220  ;;  %v208_v25 = vadd.f32 %v200_v21, %v156_v20 }
 0x2f2   :  { %v252_v26 = vmul.f32 %v3527_v32, %v221_v24 }
 0x2f4   :  { %v260_v36 = vadd.f32 %v252_v26, %v208_v25 }
 0x3af   :  { %v535_v29 = vpop.f32.mrb[2].mxu0  ;;  %v637_v30 = vpop.f32.mrb[2].mxu1 }
 0x3b0   :  { %v536_v31 = vadd.f32 %v535_v29, %v460_v6  ;;  %v2808_v33 = vpop.f32.mrb[3].mxu0  ;;  %v2819_v34 = vpop.f32.mrb[3].mxu1  ;;  %v641_v37 = vadd.f32 %v637_v30, %v260_v36 }
 0x3b2   :  { %v539_v35 = vadd.f32 %v3601_v28, %v536_v31  ;;  %v2613_v41 = vmul.f32 -1.442695, %v641_v37 }
 0x3b4   :  { %3235 = vtanh.f32 %v539_v35  ;;  %v2611_v40 = vmul.f32 -1.442695, %v539_v35 }
 0x3b5   :  { %3237 = vtanh.f32 %v641_v37 }
 0x3b6   :  { %3239 = vpow2.f32 %v2611_v40 }
 0x3b7   :  { %3241 = vpow2.f32 %v2613_v41 }
 0x3be   :  { %v3236_v38 = vpop.eup %3235 }
 0x3bf   :  { %549 = vrot.lane.b32.xlu1 %v3236_v38, %s3423_s1  ;;  %v3238_v39 = vpop.eup %3237 }
 0x3c0   :  { %v3240_v42 = vpop.eup %3239 }
 0x3c1   :  { %v543_v43 = vadd.f32 1.0, %v3240_v42  ;;  %v3242_v44 = vpop.eup %3241 }
 0x3c2   :  { %v645_v45 = vadd.f32 1.0, %v3242_v44 }
 0x3c3   :  { %651 = vrot.lane.b32.xlu1 %v3238_v39, %s3423_s1  ;;  %3243 = vrcp.f32 %v543_v43 }
 0x3c4   :  { %3245 = vrcp.f32 %v645_v45 }
 0x3cd   :  { %v3244_v46 = vpop.eup %3243 }
 0x3ce   :  { %v3246_v50 = vpop.eup %3245  ;;  %v547_v53 = vmul.f32 0.0, %v3244_v46 }
 0x3cf   :  { %v649_v57 = vmul.f32 %v3246_v50, %v3532_v49  ;;  %v45_v49 = vld [vmem:[%s3983_s0 + $0x10] sm:$0xff] }
 0x431   :  { %v550_v47 = vpop.permute.xlu1 %549 }
 0x432   :  { %v552_v48 = vmul.f32 %v3244_v46, %v550_v47 }
 0x434   :  { %554 = vrot.lane.b32.xlu0 %v552_v48, %s3424_s24 }
 0x435   :  { %v652_v51 = vpop.permute.xlu1 %651 }
 0x436   :  { %v654_v52 = vmul.f32 %v3246_v50, %v652_v51 }
 0x438   :  { %656 = vrot.lane.b32.xlu1 %v654_v52, %s3424_s24 }
 0x4a6   :  { %v555_v55 = vpop.permute.xlu0 %554 }
 0x4a7   :  { %v3608_v56 = vadd.f32 %v555_v55, %v547_v53 }
 0x4a9   :  { %3247 = vtanh.f32 %v3608_v56 }
 0x4aa   :  { %v657_v59 = vpop.permute.xlu1 %656 }
 0x4ab   :  { %v3612_v60 = vadd.f32 %v657_v59, %v649_v57 }
 0x4ad   :  { %3249 = vtanh.f32 %v3612_v60 }
 0x4b3   :  { %v3248_v61 = vpop.eup %3247 }
 0x4b4   :  { %560 = vrot.lane.b32.xlu0 %v3248_v61, %s3423_s1 }
 0x4b7   :  { %v3250_v4 = vpop.eup %3249 }
 0x4b8   :  { %662 = vrot.lane.b32.xlu1 %v3250_v4, %s3423_s1 }
 0x526   :  { %v561_v5 = vpop.permute.xlu0 %560 }
 0x527   :  { %v563_v6 = vmul.f32 %v3244_v46, %v561_v5 }
 0x529   :  { %565 = vrot.lane.b32.xlu0 %v563_v6, %s3424_s24 }
 0x52a   :  { %v663_v8 = vpop.permute.xlu1 %662 }
 0x52b   :  { %v665_v9 = vmul.f32 %v3246_v50, %v663_v8 }
 0x52d   :  { %739 = vrot.lane.b32.xlu1 %v665_v9, %s3424_s24  ;;  %63 = vperm.xlu0 %3203, %v45_v49  }
 0x531   :  { %120 = vperm.xlu1 %3204, %v45_v49   ;;  %3206 = vset.pattern.permute.xlu0 %v3422_v12 }
 0x532   :  { %224 = vperm.xlu0 %3206, %v45_v49  }
 0x535   :  { %3205 = vset.pattern.permute.xlu1 %v3420_v3 }
 0x536   :  { %172 = vperm.xlu1 %3205, %v45_v49   ;;  %3207 = vset.pattern.permute.xlu0 %v3419_v2 }
 0x53a   :  { %3208 = vset.pattern.permute.xlu1 %v3421_v11 }
 0x59b   :  { %v566_v13 = vpop.permute.xlu0 %565 }
 0x59c   :  { %568 = vst.msk [vmem:[#allocation3] sm:$0xff] %vm295_vm1, %v566_v13  ;;  %2829 = vmatmul.mubr.msk.f32.vlgmr.msra.gmra.mrb[4].mxu0 %vm295_vm1, %v566_v13 }
 0x59d   :  { %3078 = vmatpush3.bf16.msra.mxu0 %v3489_v7  ;;  %2850 = vmatprep.mubr.msk.f32.mxu0 %vm3417_vm0, %v3418_v1 }
 0x59e   :  { %3079 = vmatprep.subr.bf16.mxu0 %v3416_v0 }
 0x59f   :  { %v740_v14 = vpop.permute.xlu1 %739 }
 0x5a0   :  { %2840 = vmatmul.mubr.msk.f32.vlgmr.msra.gmra.mrb[4].mxu1 %vm295_vm1, %v740_v14 }
 0x5a1   :  { %3081 = vmatpush3.bf16.msra.mxu0 %v3498_v10  ;;  %3084 = vmatpush3.bf16.msra.mxu1 %v3544_v54 }
 0x5a2   :  { %3085 = vmatprep.subr.bf16.mxu1 %v3416_v0  ;;  %3088 = vmatprep.subr.bf16.mxu0 %v3416_v0 }
 0x5a3   :  { %2861 = vmatprep.mubr.msk.f32.mxu1 %vm3417_vm0, %v3418_v1 }
 0x5a4   :  { %2851 = vmatmul.mubr.msk.f32.vlgmr.msra.gmra.mrb[6].mxu0 %vm295_vm1, %v740_v14 }
 0x5a5   :  { %3087 = vmatpush3.bf16.msra.mxu1 %v3556_v62  ;;  %3090 = vmatpush3.bf16.msra.mxu0 %v3550_v58 }
 0x5a6   :  { %3094 = vmatprep.subr.bf16.mxu1 %v3416_v0  ;;  %3091 = vmatprep.subr.bf16.mxu0 %v3416_v0 }
 0x5a7   :  { %2872 = vmatprep.mubr.msk.f32.mxu0 %vm3417_vm0, %v3418_v1 }
 0x5a9   :  { %3093 = vmatpush3.bf16.msra.mxu0 %v3560_v63 }
 0x5aa   :  { %3100 = vmatprep.subr.bf16.mxu0 %v3416_v0 }
 0x5ac   :  { %v64_v15 = vpop.permute.xlu0 %63 }
 0x5ad   :  { %v97_v17 = vmul.f32 %v3512_v18, %v64_v15 }
 0x5af   :  { %v105_v19 = vadd.f32 %v3520_v23, %v97_v17 }
 0x5b0   :  { %v121_v16 = vpop.permute.xlu1 %120 }
 0x5b1   :  { %v149_v20 = vmul.f32 %v3515_v22, %v121_v16  ;;  %v225_v26 = vpop.permute.xlu0 %224 }
 0x5b2   :  { %v253_v33 = vmul.f32 %v3527_v32, %v225_v26 }
 0x5b3   :  { %v157_v24 = vadd.f32 %v149_v20, %v105_v19 }
 0x5b5   :  { %v173_v21 = vpop.permute.xlu1 %172 }
 0x5b6   :  { %v201_v25 = vmul.f32 %v3523_v27, %v173_v21 }
 0x5b8   :  { %v209_v31 = vadd.f32 %v201_v25, %v157_v24 }
 0x5ba   :  { %v261_v37 = vadd.f32 %v253_v33, %v209_v31 }
 0x66f   :  { %v734_v29 = vpop.f32.mrb[4].mxu0 }
 0x670   :  { %v2830_v30 = vpop.f32.mrb[5].mxu0 }
 0x673   :  { %v809_v34 = vpop.f32.mrb[4].mxu1 }
 0x674   :  { %v810_v35 = vadd.f32 %v809_v34, %v734_v29  ;;  %v2841_v36 = vpop.f32.mrb[5].mxu1 }
 0x676   :  { %v813_v38 = vadd.f32 %v3601_v28, %v810_v35 }
 0x677   :  { %v912_v39 = vpop.f32.mrb[6].mxu0 }
 0x678   :  { %3251 = vtanh.f32 %v813_v38  ;;  %v916_v40 = vadd.f32 %v912_v39, %v261_v37  ;;  %v2852_v41 = vpop.f32.mrb[7].mxu0  ;;  %v2616_v44 = vmul.f32 -1.442695, %v813_v38 }
 0x67a   :  { %3253 = vtanh.f32 %v916_v40  ;;  %v2618_v45 = vmul.f32 -1.442695, %v916_v40 }
 0x67b   :  { %3255 = vpow2.f32 %v2616_v44 }
 0x67c   :  { %3257 = vpow2.f32 %v2618_v45 }
 0x682   :  { %v3252_v42 = vpop.eup %3251 }
 0x683   :  { %823 = vrot.lane.b32.xlu1 %v3252_v42, %s3423_s1 }
 0x684   :  { %v3254_v43 = vpop.eup %3253 }
 0x685   :  { %v3256_v46 = vpop.eup %3255 }
 0x686   :  { %v817_v47 = vadd.f32 1.0, %v3256_v46  ;;  %v3258_v48 = vpop.eup %3257 }
 0x687   :  { %926 = vrot.lane.b32.xlu1 %v3254_v43, %s3423_s1  ;;  %v920_v50 = vadd.f32 1.0, %v3258_v48 }
 0x688   :  { %3259 = vrcp.f32 %v817_v47 }
 0x689   :  { %3261 = vrcp.f32 %v920_v50 }
 0x692   :  { %v3260_v51 = vpop.eup %3259 }
 0x693   :  { %v3262_v55 = vpop.eup %3261  ;;  %v821_v61 = vmul.f32 %v3260_v51, %v3608_v56 }
 0x694   :  { %v924_v6 = vmul.f32 %v3262_v55, %v3612_v60  ;;  %v46_v60 = vld [vmem:[%s3983_s0 + $0x18] sm:$0xff] }
 0x6f5   :  { %v824_v52 = vpop.permute.xlu1 %823 }
 0x6f6   :  { %v826_v53 = vmul.f32 %v3260_v51, %v824_v52 }
 0x6f8   :  { %828 = vrot.lane.b32.xlu0 %v826_v53, %s3424_s24 }
 0x6f9   :  { %v927_v57 = vpop.permute.xlu1 %926 }
 0x6fa   :  { %v929_v59 = vmul.f32 %v3262_v55, %v927_v57 }
 0x6fc   :  { %931 = vrot.lane.b32.xlu1 %v929_v59, %s3424_s24 }
 0x76a   :  { %v829_v4 = vpop.permute.xlu0 %828 }
 0x76b   :  { %v3659_v5 = vadd.f32 %v829_v4, %v821_v61 }
 0x76d   :  { %3263 = vtanh.f32 %v3659_v5 }
 0x76e   :  { %v932_v8 = vpop.permute.xlu1 %931 }
 0x76f   :  { %v3663_v49 = vadd.f32 %v932_v8, %v924_v6 }
 0x771   :  { %3265 = vtanh.f32 %v3663_v49 }
 0x777   :  { %v3264_v9 = vpop.eup %3263 }
 0x778   :  { %834 = vrot.lane.b32.xlu0 %v3264_v9, %s3423_s1 }
 0x77b   :  { %v3266_v13 = vpop.eup %3265 }
 0x77c   :  { %937 = vrot.lane.b32.xlu1 %v3266_v13, %s3423_s1 }
 0x7ea   :  { %v835_v14 = vpop.permute.xlu0 %834 }
 0x7eb   :  { %v837_v56 = vmul.f32 %v3260_v51, %v835_v14 }
 0x7ed   :  { %839 = vrot.lane.b32.xlu0 %v837_v56, %s3424_s24 }
 0x7ee   :  { %v938_v15 = vpop.permute.xlu1 %937 }
 0x7ef   :  { %v940_v16 = vmul.f32 %v3262_v55, %v938_v15 }
 0x7f1   :  { %1014 = vrot.lane.b32.xlu1 %v940_v16, %s3424_s24  ;;  %68 = vperm.xlu0 %3207, %v46_v60  }
 0x7f5   :  { %124 = vperm.xlu1 %3208, %v46_v60   ;;  %3210 = vset.pattern.permute.xlu0 %v3422_v12 }
 0x7f6   :  { %228 = vperm.xlu0 %3210, %v46_v60  }
 0x7f9   :  { %3209 = vset.pattern.permute.xlu1 %v3420_v3 }
 0x7fa   :  { %176 = vperm.xlu1 %3209, %v46_v60   ;;  %3211 = vset.pattern.permute.xlu0 %v3419_v2 }
 0x7fe   :  { %3212 = vset.pattern.permute.xlu1 %v3421_v11 }
 0x85f   :  { %v840_v17 = vpop.permute.xlu0 %839 }
 0x860   :  { %843 = vst.msk [vmem:[#allocation3 + $0x8] sm:$0xff] %vm295_vm1, %v840_v17  ;;  %2862 = vmatmul.mubr.msk.f32.vlgmr.msra.gmra.mrb[6].mxu1 %vm295_vm1, %v840_v17 }
 0x861   :  { %3096 = vmatpush3.bf16.msra.mxu1 %v3489_v7  ;;  %2883 = vmatprep.mubr.msk.f32.mxu1 %vm3417_vm0, %v3418_v1 }
 0x862   :  { %3097 = vmatprep.subr.bf16.mxu1 %v3416_v0 }
 0x863   :  { %v1015_v19 = vpop.permute.xlu1 %1014 }
 0x864   :  { %2873 = vmatmul.mubr.msk.f32.vlgmr.msra.gmra.mrb[8].mxu0 %vm295_vm1, %v1015_v19 }
 0x865   :  { %3099 = vmatpush3.bf16.msra.mxu1 %v3498_v10  ;;  %3102 = vmatpush3.bf16.msra.mxu0 %v3544_v54 }
 0x866   :  { %3103 = vmatprep.subr.bf16.mxu0 %v3416_v0  ;;  %3106 = vmatprep.subr.bf16.mxu1 %v3416_v0 }
 0x867   :  { %2894 = vmatprep.mubr.msk.f32.mxu0 %vm3417_vm0, %v3418_v1 }
 0x868   :  { %2884 = vmatmul.mubr.msk.f32.vlgmr.msra.gmra.mrb[8].mxu1 %vm295_vm1, %v1015_v19 }
 0x869   :  { %3105 = vmatpush3.bf16.msra.mxu0 %v3556_v62  ;;  %3108 = vmatpush3.bf16.msra.mxu1 %v3550_v58 }
 0x86a   :  { %3112 = vmatprep.subr.bf16.mxu0 %v3416_v0  ;;  %3109 = vmatprep.subr.bf16.mxu1 %v3416_v0 }
 0x86b   :  { %2905 = vmatprep.mubr.msk.f32.mxu1 %vm3417_vm0, %v3418_v1 }
 0x86d   :  { %3111 = vmatpush3.bf16.msra.mxu1 %v3560_v63 }
 0x86e   :  { %3118 = vmatprep.subr.bf16.mxu1 %v3416_v0 }
 0x870   :  { %v69_v20 = vpop.permute.xlu0 %68 }
 0x871   :  { %v98_v24 = vmul.f32 %v3512_v18, %v69_v20 }
 0x873   :  { %v106_v25 = vadd.f32 %v3520_v23, %v98_v24 }
 0x874   :  { %v125_v21 = vpop.permute.xlu1 %124 }
 0x875   :  { %v150_v26 = vmul.f32 %v3515_v22, %v125_v21  ;;  %v229_v33 = vpop.permute.xlu0 %228 }
 0x876   :  { %v254_v37 = vmul.f32 %v3527_v32, %v229_v33 }
 0x877   :  { %v158_v30 = vadd.f32 %v150_v26, %v106_v25 }
 0x879   :  { %v177_v29 = vpop.permute.xlu1 %176 }
 0x87a   :  { %v202_v31 = vmul.f32 %v3523_v27, %v177_v29 }
 0x87c   :  { %v210_v36 = vadd.f32 %v202_v31, %v158_v30 }
 0x87e   :  { %v262_v41 = vadd.f32 %v254_v37, %v210_v36 }
 0x933   :  { %v1009_v34 = vpop.f32.mrb[6].mxu1 }
 0x934   :  { %v2863_v35 = vpop.f32.mrb[7].mxu1 }
 0x937   :  { %v1084_v38 = vpop.f32.mrb[8].mxu0 }
 0x938   :  { %v1085_v39 = vadd.f32 %v1084_v38, %v1009_v34  ;;  %v2874_v40 = vpop.f32.mrb[9].mxu0 }
 0x93a   :  { %v1088_v42 = vadd.f32 %v3601_v28, %v1085_v39 }
 0x93b   :  { %v1187_v43 = vpop.f32.mrb[8].mxu1 }
 0x93c   :  { %3267 = vtanh.f32 %v1088_v42  ;;  %v1191_v44 = vadd.f32 %v1187_v43, %v262_v41  ;;  %v2885_v45 = vpop.f32.mrb[9].mxu1  ;;  %v2621_v48 = vmul.f32 -1.442695, %v1088_v42 }
 0x93e   :  { %3269 = vtanh.f32 %v1191_v44  ;;  %v2623_v50 = vmul.f32 -1.442695, %v1191_v44 }
 0x93f   :  { %3271 = vpow2.f32 %v2621_v48 }
 0x940   :  { %3273 = vpow2.f32 %v2623_v50 }
 0x946   :  { %v3268_v46 = vpop.eup %3267 }
 0x947   :  { %1098 = vrot.lane.b32.xlu1 %v3268_v46, %s3423_s1 }
 0x948   :  { %v3270_v47 = vpop.eup %3269 }
 0x949   :  { %v3272_v51 = vpop.eup %3271 }
 0x94a   :  { %v1092_v52 = vadd.f32 1.0, %v3272_v51  ;;  %v3274_v53 = vpop.eup %3273 }
 0x94b   :  { %1201 = vrot.lane.b32.xlu1 %v3270_v47, %s3423_s1  ;;  %v1195_v55 = vadd.f32 1.0, %v3274_v53 }
 0x94c   :  { %3275 = vrcp.f32 %v1092_v52 }
 0x94d   :  { %3277 = vrcp.f32 %v1195_v55 }
 0x956   :  { %v3276_v57 = vpop.eup %3275 }
 0x957   :  { %v3278_v4 = vpop.eup %3277  ;;  %v1096_v9 = vmul.f32 %v3276_v57, %v3659_v5 }
 0x958   :  { %v1199_v56 = vmul.f32 %v3278_v4, %v3663_v49  ;;  %v47_v49 = vld [vmem:[%s3983_s0 + $0x20] sm:$0xff] }
 0x9b9   :  { %v1099_v59 = vpop.permute.xlu1 %1098 }
 0x9ba   :  { %v1101_v61 = vmul.f32 %v3276_v57, %v1099_v59 }
 0x9bc   :  { %1103 = vrot.lane.b32.xlu0 %v1101_v61, %s3424_s24 }
 0x9bd   :  { %v1202_v6 = vpop.permute.xlu1 %1201 }
 0x9be   :  { %v1204_v8 = vmul.f32 %v3278_v4, %v1202_v6 }
 0x9c0   :  { %1206 = vrot.lane.b32.xlu1 %v1204_v8, %s3424_s24 }
 0xa2e   :  { %v1104_v13 = vpop.permute.xlu0 %1103 }
 0xa2f   :  { %v3710_v14 = vadd.f32 %v1104_v13, %v1096_v9 }
 0xa31   :  { %3279 = vtanh.f32 %v3710_v14 }
 0xa32   :  { %v1207_v15 = vpop.permute.xlu1 %1206 }
 0xa33   :  { %v3714_v60 = vadd.f32 %v1207_v15, %v1199_v56 }
 0xa35   :  { %3281 = vtanh.f32 %v3714_v60 }
 0xa3b   :  { %v3280_v16 = vpop.eup %3279 }
 0xa3c   :  { %1109 = vrot.lane.b32.xlu0 %v3280_v16, %s3423_s1 }
 0xa3f   :  { %v3282_v17 = vpop.eup %3281 }
 0xa40   :  { %1212 = vrot.lane.b32.xlu1 %v3282_v17, %s3423_s1 }
 0xaae   :  { %v1110_v19 = vpop.permute.xlu0 %1109 }
 0xaaf   :  { %v1112_v5 = vmul.f32 %v3276_v57, %v1110_v19 }
 0xab1   :  { %1114 = vrot.lane.b32.xlu0 %v1112_v5, %s3424_s24 }
 0xab2   :  { %v1213_v20 = vpop.permute.xlu1 %1212 }
 0xab3   :  { %v1215_v21 = vmul.f32 %v3278_v4, %v1213_v20 }
 0xab5   :  { %1289 = vrot.lane.b32.xlu1 %v1215_v21, %s3424_s24  ;;  %73 = vperm.xlu0 %3211, %v47_v49  }
 0xab9   :  { %128 = vperm.xlu1 %3212, %v47_v49   ;;  %3214 = vset.pattern.permute.xlu0 %v3422_v12 }
 0xaba   :  { %232 = vperm.xlu0 %3214, %v47_v49  }
 0xabd   :  { %3213 = vset.pattern.permute.xlu1 %v3420_v3 }
 0xabe   :  { %180 = vperm.xlu1 %3213, %v47_v49   ;;  %3215 = vset.pattern.permute.xlu0 %v3419_v2 }
 0xac2   :  { %3216 = vset.pattern.permute.xlu1 %v3421_v11 }
 0xb23   :  { %v1115_v24 = vpop.permute.xlu0 %1114 }
 0xb24   :  { %1118 = vst.msk [vmem:[#allocation3 + $0x10] sm:$0xff] %vm295_vm1, %v1115_v24  ;;  %2895 = vmatmul.mubr.msk.f32.vlgmr.msra.gmra.mrb[10].mxu0 %vm295_vm1, %v1115_v24 }
 0xb25   :  { %3114 = vmatpush3.bf16.msra.mxu0 %v3489_v7  ;;  %2916 = vmatprep.mubr.msk.f32.mxu0 %vm3417_vm0, %v3418_v1 }
 0xb26   :  { %3115 = vmatprep.subr.bf16.mxu0 %v3416_v0 }
 0xb27   :  { %v1290_v25 = vpop.permute.xlu1 %1289 }
 0xb28   :  { %2906 = vmatmul.mubr.msk.f32.vlgmr.msra.gmra.mrb[10].mxu1 %vm295_vm1, %v1290_v25 }
 0xb29   :  { %3117 = vmatpush3.bf16.msra.mxu0 %v3498_v10  ;;  %3120 = vmatpush3.bf16.msra.mxu1 %v3544_v54 }
 0xb2a   :  { %3121 = vmatprep.subr.bf16.mxu1 %v3416_v0  ;;  %3124 = vmatprep.subr.bf16.mxu0 %v3416_v0 }
 0xb2b   :  { %2927 = vmatprep.mubr.msk.f32.mxu1 %vm3417_vm0, %v3418_v1 }
 0xb2c   :  { %2917 = vmatmul.mubr.msk.f32.vlgmr.msra.gmra.mrb[12].mxu0 %vm295_vm1, %v1290_v25 }
 0xb2d   :  { %3123 = vmatpush3.bf16.msra.mxu1 %v3556_v62  ;;  %3126 = vmatpush3.bf16.msra.mxu0 %v3550_v58 }
 0xb2e   :  { %3130 = vmatprep.subr.bf16.mxu1 %v3416_v0  ;;  %3127 = vmatprep.subr.bf16.mxu0 %v3416_v0 }
 0xb2f   :  { %2938 = vmatprep.mubr.msk.f32.mxu0 %vm3417_vm0, %v3418_v1 }
 0xb31   :  { %3129 = vmatpush3.bf16.msra.mxu0 %v3560_v63 }
 0xb32   :  { %3136 = vmatprep.subr.bf16.mxu0 %v3416_v0 }
 0xb34   :  { %v74_v26 = vpop.permute.xlu0 %73 }
 0xb35   :  { %v99_v30 = vmul.f32 %v3512_v18, %v74_v26 }
 0xb37   :  { %v107_v31 = vadd.f32 %v3520_v23, %v99_v30 }
 0xb38   :  { %v129_v29 = vpop.permute.xlu1 %128 }
 0xb39   :  { %v151_v33 = vmul.f32 %v3515_v22, %v129_v29  ;;  %v233_v37 = vpop.permute.xlu0 %232 }
 0xb3a   :  { %v255_v41 = vmul.f32 %v3527_v32, %v233_v37 }
 0xb3b   :  { %v159_v35 = vadd.f32 %v151_v33, %v107_v31 }
 0xb3d   :  { %v181_v34 = vpop.permute.xlu1 %180 }
 0xb3e   :  { %v203_v36 = vmul.f32 %v3523_v27, %v181_v34 }
 0xb40   :  { %v211_v40 = vadd.f32 %v203_v36, %v159_v35 }
 0xb42   :  { %v263_v45 = vadd.f32 %v255_v41, %v211_v40 }
 0xbf7   :  { %v1284_v38 = vpop.f32.mrb[10].mxu0 }
 0xbf8   :  { %v2896_v39 = vpop.f32.mrb[11].mxu0 }
 0xbfb   :  { %v1359_v42 = vpop.f32.mrb[10].mxu1 }
 0xbfc   :  { %v1360_v43 = vadd.f32 %v1359_v42, %v1284_v38  ;;  %v2907_v44 = vpop.f32.mrb[11].mxu1 }
 0xbfe   :  { %v1363_v46 = vadd.f32 %v3601_v28, %v1360_v43 }
 0xbff   :  { %v1462_v47 = vpop.f32.mrb[12].mxu0 }
 0xc00   :  { %3283 = vtanh.f32 %v1363_v46  ;;  %v1466_v48 = vadd.f32 %v1462_v47, %v263_v45  ;;  %v2918_v50 = vpop.f32.mrb[13].mxu0  ;;  %v2626_v53 = vmul.f32 -1.442695, %v1363_v46 }
 0xc02   :  { %3285 = vtanh.f32 %v1466_v48  ;;  %v2628_v55 = vmul.f32 -1.442695, %v1466_v48 }
 0xc03   :  { %3287 = vpow2.f32 %v2626_v53 }
 0xc04   :  { %3289 = vpow2.f32 %v2628_v55 }
 0xc0a   :  { %v3284_v51 = vpop.eup %3283 }
 0xc0b   :  { %1373 = vrot.lane.b32.xlu1 %v3284_v51, %s3423_s1 }
 0xc0c   :  { %v3286_v52 = vpop.eup %3285 }
 0xc0d   :  { %v3288_v57 = vpop.eup %3287 }
 0xc0e   :  { %v1367_v59 = vadd.f32 1.0, %v3288_v57  ;;  %v3290_v61 = vpop.eup %3289 }
 0xc0f   :  { %1476 = vrot.lane.b32.xlu1 %v3286_v52, %s3423_s1  ;;  %v1470_v4 = vadd.f32 1.0, %v3290_v61 }
 0xc10   :  { %3291 = vrcp.f32 %v1367_v59 }
 0xc11   :  { %3293 = vrcp.f32 %v1470_v4 }
 0xc1a   :  { %v3292_v6 = vpop.eup %3291 }
 0xc1b   :  { %v3294_v13 = vpop.eup %3293  ;;  %v1371_v16 = vmul.f32 %v3292_v6, %v3710_v14 }
 0xc1c   :  { %v1474_v5 = vmul.f32 %v3294_v13, %v3714_v60  ;;  %v48_v60 = vld [vmem:[%s3983_s0 + $0x28] sm:$0xff] }
 0xc7d   :  { %v1374_v8 = vpop.permute.xlu1 %1373 }
 0xc7e   :  { %v1376_v9 = vmul.f32 %v3292_v6, %v1374_v8 }
 0xc80   :  { %1378 = vrot.lane.b32.xlu0 %v1376_v9, %s3424_s24 }
 0xc81   :  { %v1477_v56 = vpop.permute.xlu1 %1476 }
 0xc82   :  { %v1479_v15 = vmul.f32 %v3294_v13, %v1477_v56 }
 0xc84   :  { %1481 = vrot.lane.b32.xlu1 %v1479_v15, %s3424_s24 }
 0xcf2   :  { %v1379_v17 = vpop.permute.xlu0 %1378 }
 0xcf3   :  { %v3761_v19 = vadd.f32 %v1379_v17, %v1371_v16 }
 0xcf5   :  { %3295 = vtanh.f32 %v3761_v19 }
 0xcf6   :  { %v1482_v20 = vpop.permute.xlu1 %1481 }
 0xcf7   :  { %v3765_v49 = vadd.f32 %v1482_v20, %v1474_v5 }
 0xcf9   :  { %3297 = vtanh.f32 %v3765_v49 }
 0xcff   :  { %v3296_v21 = vpop.eup %3295 }
 0xd00   :  { %1384 = vrot.lane.b32.xlu0 %v3296_v21, %s3423_s1 }
 0xd03   :  { %v3298_v24 = vpop.eup %3297 }
 0xd04   :  { %1487 = vrot.lane.b32.xlu1 %v3298_v24, %s3423_s1 }
 0xd72   :  { %v1385_v25 = vpop.permute.xlu0 %1384 }
 0xd73   :  { %v1387_v14 = vmul.f32 %v3292_v6, %v1385_v25 }
 0xd75   :  { %1389 = vrot.lane.b32.xlu0 %v1387_v14, %s3424_s24 }
 0xd76   :  { %v1488_v26 = vpop.permute.xlu1 %1487 }
 0xd77   :  { %v1490_v29 = vmul.f32 %v3294_v13, %v1488_v26 }
 0xd79   :  { %1564 = vrot.lane.b32.xlu1 %v1490_v29, %s3424_s24  ;;  %78 = vperm.xlu0 %3215, %v48_v60  }
 0xd7d   :  { %132 = vperm.xlu1 %3216, %v48_v60   ;;  %3218 = vset.pattern.permute.xlu0 %v3422_v12 }
 0xd7e   :  { %236 = vperm.xlu0 %3218, %v48_v60  }
 0xd81   :  { %3217 = vset.pattern.permute.xlu1 %v3420_v3 }
 0xd82   :  { %184 = vperm.xlu1 %3217, %v48_v60   ;;  %3219 = vset.pattern.permute.xlu0 %v3419_v2 }
 0xd86   :  { %3220 = vset.pattern.permute.xlu1 %v3421_v11 }
 0xde7   :  { %v1390_v30 = vpop.permute.xlu0 %1389 }
 0xde8   :  { %1393 = vst.msk [vmem:[#allocation3 + $0x18] sm:$0xff] %vm295_vm1, %v1390_v30  ;;  %2928 = vmatmul.mubr.msk.f32.vlgmr.msra.gmra.mrb[12].mxu1 %vm295_vm1, %v1390_v30 }
 0xde9   :  { %3132 = vmatpush3.bf16.msra.mxu1 %v3489_v7  ;;  %2949 = vmatprep.mubr.msk.f32.mxu1 %vm3417_vm0, %v3418_v1 }
 0xdea   :  { %3133 = vmatprep.subr.bf16.mxu1 %v3416_v0 }
 0xdeb   :  { %v1565_v31 = vpop.permute.xlu1 %1564 }
 0xdec   :  { %2939 = vmatmul.mubr.msk.f32.vlgmr.msra.gmra.mrb[14].mxu0 %vm295_vm1, %v1565_v31 }
 0xded   :  { %3135 = vmatpush3.bf16.msra.mxu1 %v3498_v10  ;;  %3138 = vmatpush3.bf16.msra.mxu0 %v3544_v54 }
 0xdee   :  { %3139 = vmatprep.subr.bf16.mxu0 %v3416_v0  ;;  %3142 = vmatprep.subr.bf16.mxu1 %v3416_v0 }
 0xdef   :  { %2960 = vmatprep.mubr.msk.f32.mxu0 %vm3417_vm0, %v3418_v1 }
 0xdf0   :  { %2950 = vmatmul.mubr.msk.f32.vlgmr.msra.gmra.mrb[14].mxu1 %vm295_vm1, %v1565_v31 }
 0xdf1   :  { %3141 = vmatpush3.bf16.msra.mxu0 %v3556_v62  ;;  %3144 = vmatpush3.bf16.msra.mxu1 %v3550_v58 }
 0xdf2   :  { %3148 = vmatprep.subr.bf16.mxu0 %v3416_v0  ;;  %3145 = vmatprep.subr.bf16.mxu1 %v3416_v0 }
 0xdf3   :  { %2971 = vmatprep.mubr.msk.f32.mxu1 %vm3417_vm0, %v3418_v1 }
 0xdf5   :  { %3147 = vmatpush3.bf16.msra.mxu1 %v3560_v63 }
 0xdf6   :  { %3154 = vmatprep.subr.bf16.mxu1 %v3416_v0 }
 0xdf8   :  { %v79_v33 = vpop.permute.xlu0 %78 }
 0xdf9   :  { %v100_v35 = vmul.f32 %v3512_v18, %v79_v33 }
 0xdfb   :  { %v108_v36 = vadd.f32 %v3520_v23, %v100_v35 }
 0xdfc   :  { %v133_v34 = vpop.permute.xlu1 %132 }
 0xdfd   :  { %v152_v37 = vmul.f32 %v3515_v22, %v133_v34  ;;  %v237_v41 = vpop.permute.xlu0 %236 }
 0xdfe   :  { %v256_v45 = vmul.f32 %v3527_v32, %v237_v41 }
 0xdff   :  { %v160_v39 = vadd.f32 %v152_v37, %v108_v36  ;;  %v3856_v37 = vld [vmem:[%s3987_s4] ss:$0 sm:$0xff] }
 0xe01   :  { %v185_v38 = vpop.permute.xlu1 %184 }
 0xe02   :  { %v204_v40 = vmul.f32 %v3523_v27, %v185_v38 }
 0xe04   :  { %v212_v44 = vadd.f32 %v204_v40, %v160_v39 }
 0xe06   :  { %v264_v50 = vadd.f32 %v256_v45, %v212_v44 }
 0xebb   :  { %v1559_v42 = vpop.f32.mrb[12].mxu1 }
 0xebc   :  { %v2929_v43 = vpop.f32.mrb[13].mxu1 }
 0xebf   :  { %v1634_v46 = vpop.f32.mrb[14].mxu0 }
 0xec0   :  { %v1635_v47 = vadd.f32 %v1634_v46, %v1559_v42  ;;  %v2940_v48 = vpop.f32.mrb[15].mxu0 }
 0xec2   :  { %v1638_v51 = vadd.f32 %v3601_v28, %v1635_v47 }
 0xec3   :  { %v1737_v52 = vpop.f32.mrb[14].mxu1 }
 0xec4   :  { %3299 = vtanh.f32 %v1638_v51  ;;  %v1741_v23 = vadd.f32 %v1737_v52, %v264_v50  ;;  %v2951_v53 = vpop.f32.mrb[15].mxu1  ;;  %v2631_v59 = vmul.f32 -1.442695, %v1638_v51 }
 0xec6   :  { %3301 = vtanh.f32 %v1741_v23  ;;  %v2633_v61 = vmul.f32 -1.442695, %v1741_v23 }
 0xec7   :  { %3303 = vpow2.f32 %v2631_v59 }
 0xec8   :  { %3305 = vpow2.f32 %v2633_v61 }
 0xece   :  { %v3300_v55 = vpop.eup %3299 }
 0xecf   :  { %1648 = vrot.lane.b32.xlu1 %v3300_v55, %s3423_s1 }
 0xed0   :  { %v3302_v57 = vpop.eup %3301 }
 0xed1   :  { %v3304_v4 = vpop.eup %3303 }
 0xed2   :  { %v1642_v6 = vadd.f32 1.0, %v3304_v4  ;;  %v3306_v8 = vpop.eup %3305 }
 0xed3   :  { %1751 = vrot.lane.b32.xlu1 %v3302_v57, %s3423_s1  ;;  %v1745_v9 = vadd.f32 1.0, %v3306_v8 }
 0xed4   :  { %3307 = vrcp.f32 %v1642_v6 }
 0xed5   :  { %3309 = vrcp.f32 %v1745_v9 }
 0xede   :  { %v3308_v13 = vpop.eup %3307 }
 0xedf   :  { %v3310_v16 = vpop.eup %3309  ;;  %v1646_v20 = vmul.f32 %v3308_v13, %v3761_v19 }
 0xee0   :  { %v1749_v25 = vmul.f32 %v3310_v16, %v3765_v49  ;;  %v49_v49 = vld [vmem:[%s3983_s0 + $0x30] sm:$0xff] }
 0xf41   :  { %v1649_v56 = vpop.permute.xlu1 %1648 }
 0xf42   :  { %v1651_v15 = vmul.f32 %v3308_v13, %v1649_v56 }
 0xf44   :  { %1653 = vrot.lane.b32.xlu0 %v1651_v15, %s3424_s24 }
 0xf45   :  { %v1752_v17 = vpop.permute.xlu1 %1751 }
 0xf46   :  { %v1754_v5 = vmul.f32 %v3310_v16, %v1752_v17 }
 0xf48   :  { %1756 = vrot.lane.b32.xlu1 %v1754_v5, %s3424_s24 }
 0xfb6   :  { %v1654_v21 = vpop.permute.xlu0 %1653 }
 0xfb7   :  { %v3812_v24 = vadd.f32 %v1654_v21, %v1646_v20 }
 0xfb9   :  { %3311 = vtanh.f32 %v3812_v24 }
 0xfba   :  { %v1757_v14 = vpop.permute.xlu1 %1756 }
 0xfbb   :  { %v3816_v26 = vadd.f32 %v1757_v14, %v1749_v25 }
 0xfbd   :  { %3313 = vtanh.f32 %v3816_v26 }
 0xfc3   :  { %v3312_v60 = vpop.eup %3311 }
 0xfc4   :  { %1659 = vrot.lane.b32.xlu0 %v3312_v60, %s3423_s1 }
 0xfc7   :  { %v3314_v29 = vpop.eup %3313 }
 0xfc8   :  { %1762 = vrot.lane.b32.xlu1 %v3314_v29, %s3423_s1 }
0x1036   :  { %v1660_v30 = vpop.permute.xlu0 %1659 }
0x1037   :  { %v1662_v19 = vmul.f32 %v3308_v13, %v1660_v30 }
0x1039   :  { %1664 = vrot.lane.b32.xlu0 %v1662_v19, %s3424_s24 }
0x103a   :  { %v1763_v31 = vpop.permute.xlu1 %1762 }
0x103b   :  { %v1765_v33 = vmul.f32 %v3310_v16, %v1763_v31 }
0x103d   :  { %1839 = vrot.lane.b32.xlu1 %v1765_v33, %s3424_s24  ;;  %83 = vperm.xlu0 %3219, %v49_v49  }
0x1041   :  { %136 = vperm.xlu1 %3220, %v49_v49   ;;  %3222 = vset.pattern.permute.xlu0 %v3422_v12 }
0x1042   :  { %240 = vperm.xlu0 %3222, %v49_v49  }
0x1045   :  { %3221 = vset.pattern.permute.xlu1 %v3420_v3 }
0x1046   :  { %188 = vperm.xlu1 %3221, %v49_v49   ;;  %3223 = vset.pattern.permute.xlu0 %v3419_v2 }
0x104a   :  { %3224 = vset.pattern.permute.xlu1 %v3421_v11 }
0x10ab   :  { %v1665_v34 = vpop.permute.xlu0 %1664 }
0x10ac   :  { %1668 = vst.msk [vmem:[#allocation3 + $0x20] sm:$0xff] %vm295_vm1, %v1665_v34  ;;  %2961 = vmatmul.mubr.msk.f32.vlgmr.msra.gmra.mrb[16].mxu0 %vm295_vm1, %v1665_v34 }
0x10ad   :  { %3150 = vmatpush3.bf16.msra.mxu0 %v3489_v7  ;;  %2982 = vmatprep.mubr.msk.f32.mxu0 %vm3417_vm0, %v3418_v1 }
0x10ae   :  { %3151 = vmatprep.subr.bf16.mxu0 %v3416_v0 }
0x10af   :  { %v1840_v35 = vpop.permute.xlu1 %1839 }
0x10b0   :  { %2972 = vmatmul.mubr.msk.f32.vlgmr.msra.gmra.mrb[16].mxu1 %vm295_vm1, %v1840_v35 }
0x10b1   :  { %3153 = vmatpush3.bf16.msra.mxu0 %v3498_v10  ;;  %3156 = vmatpush3.bf16.msra.mxu1 %v3544_v54 }
0x10b2   :  { %3157 = vmatprep.subr.bf16.mxu1 %v3416_v0  ;;  %3160 = vmatprep.subr.bf16.mxu0 %v3416_v0 }
0x10b3   :  { %2993 = vmatprep.mubr.msk.f32.mxu1 %vm3417_vm0, %v3418_v1 }
0x10b4   :  { %2983 = vmatmul.mubr.msk.f32.vlgmr.msra.gmra.mrb[18].mxu0 %vm295_vm1, %v1840_v35 }
0x10b5   :  { %3159 = vmatpush3.bf16.msra.mxu1 %v3556_v62  ;;  %3162 = vmatpush3.bf16.msra.mxu0 %v3550_v58 }
0x10b6   :  { %3166 = vmatprep.subr.bf16.mxu1 %v3416_v0  ;;  %3163 = vmatprep.subr.bf16.mxu0 %v3416_v0 }
0x10b7   :  { %3004 = vmatprep.mubr.msk.f32.mxu0 %vm3417_vm0, %v3418_v1 }
0x10b9   :  { %3165 = vmatpush3.bf16.msra.mxu0 %v3560_v63 }
0x10ba   :  { %3172 = vmatprep.subr.bf16.mxu0 %v3416_v0 }
0x10bc   :  { %v84_v2 = vpop.permute.xlu0 %83 }
0x10bd   :  { %v101_v36 = vmul.f32 %v3512_v18, %v84_v2 }
0x10bf   :  { %v109_v38 = vadd.f32 %v3856_v37, %v101_v36 }
0x10c0   :  { %v137_v11 = vpop.permute.xlu1 %136 }
0x10c1   :  { %v153_v39 = vmul.f32 %v3515_v22, %v137_v11  ;;  %v241_v43 = vpop.permute.xlu0 %240 }
0x10c2   :  { %v257_v47 = vmul.f32 %v3527_v32, %v241_v43 }
0x10c3   :  { %v161_v41 = vadd.f32 %v153_v39, %v109_v38 }
0x10c5   :  { %v189_v40 = vpop.permute.xlu1 %188 }
0x10c6   :  { %v205_v42 = vmul.f32 %v3523_v27, %v189_v40 }
0x10c8   :  { %v213_v46 = vadd.f32 %v205_v42, %v161_v41 }
0x10ca   :  { %v265_v52 = vadd.f32 %v257_v47, %v213_v46 }
0x117f   :  { %v1834_v44 = vpop.f32.mrb[16].mxu0 }
0x1180   :  { %v2962_v45 = vpop.f32.mrb[17].mxu0 }
0x1183   :  { %v1909_v48 = vpop.f32.mrb[16].mxu1 }
0x1184   :  { %v1910_v50 = vadd.f32 %v1909_v48, %v1834_v44  ;;  %v2973_v51 = vpop.f32.mrb[17].mxu1 }
0x1186   :  { %v1913_v23 = vadd.f32 %v3601_v28, %v1910_v50 }
0x1187   :  { %v2012_v53 = vpop.f32.mrb[18].mxu0 }
0x1188   :  { %3315 = vtanh.f32 %v1913_v23  ;;  %v2016_v55 = vadd.f32 %v2012_v53, %v265_v52  ;;  %v2984_v57 = vpop.f32.mrb[19].mxu0  ;;  %v2636_v4 = vmul.f32 -1.442695, %v1913_v23 }
0x118a   :  { %3317 = vtanh.f32 %v2016_v55  ;;  %v2638_v6 = vmul.f32 -1.442695, %v2016_v55 }
0x118b   :  { %3319 = vpow2.f32 %v2636_v4 }
0x118c   :  { %3321 = vpow2.f32 %v2638_v6 }
0x1192   :  { %v3316_v59 = vpop.eup %3315 }
0x1193   :  { %1923 = vrot.lane.b32.xlu1 %v3316_v59, %s3423_s1 }
0x1194   :  { %v3318_v61 = vpop.eup %3317 }
0x1195   :  { %v3320_v8 = vpop.eup %3319 }
0x1196   :  { %v1917_v9 = vadd.f32 1.0, %v3320_v8  ;;  %v3322_v13 = vpop.eup %3321 }
0x1197   :  { %2026 = vrot.lane.b32.xlu1 %v3318_v61, %s3423_s1  ;;  %v2020_v28 = vadd.f32 1.0, %v3322_v13 }
0x1198   :  { %3323 = vrcp.f32 %v1917_v9 }
0x1199   :  { %3325 = vrcp.f32 %v2020_v28 }
0x11a2   :  { %v3324_v56 = vpop.eup %3323 }
0x11a3   :  { %v3326_v17 = vpop.eup %3325  ;;  %v1921_v21 = vmul.f32 %v3324_v56, %v3812_v24 }
0x11a4   :  { %v2024_v60 = vmul.f32 %v3326_v17, %v3816_v26  ;;  %v50_v26 = vld [vmem:[%s3983_s0 + $0x38] sm:$0xff] }
0x1205   :  { %v1924_v15 = vpop.permute.xlu1 %1923 }
0x1206   :  { %v1926_v16 = vmul.f32 %v3324_v56, %v1924_v15 }
0x1208   :  { %1928 = vrot.lane.b32.xlu0 %v1926_v16, %s3424_s24 }
0x1209   :  { %v2027_v5 = vpop.permute.xlu1 %2026 }
0x120a   :  { %v2029_v20 = vmul.f32 %v3326_v17, %v2027_v5 }
0x120c   :  { %2031 = vrot.lane.b32.xlu1 %v2029_v20, %s3424_s24 }
0x127a   :  { %v1929_v25 = vpop.permute.xlu0 %1928 }
0x127b   :  { %v3868_v14 = vadd.f32 %v1929_v25, %v1921_v21 }
0x127d   :  { %3327 = vtanh.f32 %v3868_v14 }
0x127e   :  { %v2032_v29 = vpop.permute.xlu1 %2031 }
0x127f   :  { %v3872_v30 = vadd.f32 %v2032_v29, %v2024_v60 }
0x1281   :  { %3329 = vtanh.f32 %v3872_v30 }
0x1287   :  { %v3328_v19 = vpop.eup %3327 }
0x1288   :  { %1934 = vrot.lane.b32.xlu0 %v3328_v19, %s3423_s1 }
0x128b   :  { %v3330_v31 = vpop.eup %3329 }
0x128c   :  { %2037 = vrot.lane.b32.xlu1 %v3330_v31, %s3423_s1 }
0x12fa   :  { %v1935_v49 = vpop.permute.xlu0 %1934 }
0x12fb   :  { %v1937_v24 = vmul.f32 %v3324_v56, %v1935_v49 }
0x12fd   :  { %1939 = vrot.lane.b32.xlu0 %v1937_v24, %s3424_s24 }
0x12fe   :  { %v2038_v33 = vpop.permute.xlu1 %2037 }
0x12ff   :  { %v2040_v34 = vmul.f32 %v3326_v17, %v2038_v33 }
0x1301   :  { %2114 = vrot.lane.b32.xlu1 %v2040_v34, %s3424_s24  ;;  %88 = vperm.xlu0 %3223, %v50_v26  }
0x1305   :  { %140 = vperm.xlu1 %3224, %v50_v26   ;;  %3226 = vset.pattern.permute.xlu0 %v3422_v12 }
0x1306   :  { %244 = vperm.xlu0 %3226, %v50_v26  }
0x1309   :  { %3225 = vset.pattern.permute.xlu1 %v3420_v3 }
0x130a   :  { %192 = vperm.xlu1 %3225, %v50_v26  }
0x136f   :  { %v1940_v35 = vpop.permute.xlu0 %1939 }
0x1370   :  { %1943 = vst.msk [vmem:[#allocation3 + $0x28] sm:$0xff] %vm295_vm1, %v1940_v35  ;;  %2994 = vmatmul.mubr.msk.f32.vlgmr.msra.gmra.mrb[18].mxu1 %vm295_vm1, %v1940_v35 }
0x1371   :  { %3168 = vmatpush3.bf16.msra.mxu1 %v3489_v7  ;;  %3015 = vmatprep.mubr.msk.f32.mxu1 %vm3417_vm0, %v3418_v1 }
0x1372   :  { %3169 = vmatprep.subr.bf16.mxu1 %v3416_v0 }
0x1373   :  { %v2115_v2 = vpop.permute.xlu1 %2114 }
0x1374   :  { %3005 = vmatmul.mubr.msk.f32.vlgmr.msra.gmra.mrb[20].mxu0 %vm295_vm1, %v2115_v2 }
0x1375   :  { %3171 = vmatpush3.bf16.msra.mxu1 %v3498_v10  ;;  %3174 = vmatpush3.bf16.msra.mxu0 %v3544_v54 }
0x1376   :  { %3175 = vmatprep.subr.bf16.mxu0 %v3416_v0  ;;  %3178 = vmatprep.subr.bf16.mxu1 %v3416_v0 }
0x1377   :  { %3026 = vmatprep.mubr.msk.f32.mxu0 %vm3417_vm0, %v3418_v1 }
0x1378   :  { %3016 = vmatmul.mubr.msk.f32.vlgmr.msra.gmra.mrb[20].mxu1 %vm295_vm1, %v2115_v2 }
0x1379   :  { %3177 = vmatpush3.bf16.msra.mxu0 %v3556_v62  ;;  %3180 = vmatpush3.bf16.msra.mxu1 %v3550_v58 }
0x137a   :  { %3181 = vmatprep.subr.bf16.mxu1 %v3416_v0  ;;  %3037 = vmatprep.mubr.msk.f32.mxu1 %vm3417_vm0, %v3418_v1 }
0x137d   :  { %3183 = vmatpush3.bf16.msra.mxu1 %v3560_v63 }
0x1380   :  { %v89_v3 = vpop.permute.xlu0 %88 }
0x1381   :  { %v102_v10 = vmul.f32 %v3512_v18, %v89_v3  ;;  %v3388_v18 = vld [vmem:[%s3987_s4 + $0x1] ss:$0 sm:$0xff] }
0x1383   :  { %v110_v12 = vadd.f32 %v3856_v37, %v102_v10 }
0x1384   :  { %v141_v7 = vpop.permute.xlu1 %140 }
0x1385   :  { %v154_v54 = vmul.f32 %v3515_v22, %v141_v7  ;;  %v245_v58 = vpop.permute.xlu0 %244 }
0x1386   :  { %v258_v1 = vmul.f32 %v3527_v32, %v245_v58 }
0x1387   :  { %v162_v36 = vadd.f32 %v154_v54, %v110_v12  ;;  %v2494_v12 = vld [vmem:[#allocation3] sm:$0xff] }
0x1388   :  { %v3931_v54 = vld [vmem:[%s3988_s5] ss:$0 sm:$0xff] }
0x1389   :  { %v193_v11 = vpop.permute.xlu1 %192 }
0x138a   :  { %v206_v62 = vmul.f32 %v3523_v27, %v193_v11  ;;  %v2509_v11 = vmul.f32 %v3931_v54, %v2494_v12 }
0x138c   :  { %v214_v39 = vadd.f32 %v206_v62, %v162_v36  ;;  %v2496_v36 = vld [vmem:[#allocation3 + $0x10] sm:$0xff]  ;;  %v2517_v62 = vsel %vm295_vm1, %v2509_v11, 0.0 }
0x138d   :  { %v2511_v58 = vmul.f32 %v3931_v54, %v2496_v36 }
0x138e   :  { %v266_v42 = vadd.f32 %v258_v1, %v214_v39  ;;  %v2499_v1 = vld [vmem:[#allocation3 + $0x28] sm:$0xff] }
0x1443   :  { %v2109_v38 = vpop.f32.mrb[18].mxu1 }
0x1444   :  { %v2995_v0 = vpop.f32.mrb[19].mxu1 }
0x1445   :  { %v2523_v0 = vsel %vm295_vm1, %v2511_v58, 0.0 }
0x1447   :  { %v2184_v40 = vpop.f32.mrb[20].mxu0 }
0x1448   :  { %v2185_v63 = vadd.f32 %v2184_v40, %v2109_v38  ;;  %v3006_v41 = vpop.f32.mrb[21].mxu0  ;;  %v2497_v38 = vld [vmem:[#allocation3 + $0x18] sm:$0xff] }
0x1449   :  { %v2512_v39 = vmul.f32 %v3931_v54, %v2497_v38 }
0x144a   :  { %v2188_v37 = vadd.f32 %v3388_v18, %v2185_v63  ;;  %v2514_v63 = vmul.f32 %v3931_v54, %v2499_v1 }
0x144b   :  { %v2287_v22 = vpop.f32.mrb[20].mxu1  ;;  %v2526_v40 = vsel %vm295_vm1, %v2512_v39, 0.0 }
0x144c   :  { %3331 = vtanh.f32 %v2188_v37  ;;  %v2291_v43 = vadd.f32 %v2287_v22, %v266_v42  ;;  %v3017_v44 = vpop.f32.mrb[21].mxu1  ;;  %v2641_v32 = vmul.f32 -1.442695, %v2188_v37  ;;  %v2532_v41 = vsel %vm295_vm1, %v2514_v63, 0.0  ;;  %v2495_v37 = vld [vmem:[#allocation3 + $0x8] sm:$0xff] }
0x144d   :  { %v2510_v22 = vmul.f32 %v3931_v54, %v2495_v37 }
0x144e   :  { %3333 = vtanh.f32 %v2291_v43  ;;  %v2643_v46 = vmul.f32 -1.442695, %v2291_v43  ;;  %v2498_v43 = vld [vmem:[#allocation3 + $0x20] sm:$0xff] }
0x144f   :  { %3335 = vpow2.f32 %v2641_v32  ;;  %v2520_v44 = vsel %vm295_vm1, %v2510_v22, 0.0 }
0x1450   :  { %3337 = vpow2.f32 %v2643_v46 }
0x1456   :  { %v3332_v27 = vpop.eup %3331 }
0x1457   :  { %2198 = vrot.lane.b32.xlu1 %v3332_v27, %s3423_s1  ;;  %v2513_v27 = vmul.f32 %v3931_v54, %v2498_v43 }
0x1458   :  { %v3334_v45 = vpop.eup %3333 }
0x1459   :  { %v3336_v47 = vpop.eup %3335  ;;  %v2529_v32 = vsel %vm295_vm1, %v2513_v27, 0.0 }
0x145a   :  { %v2192_v48 = vadd.f32 1.0, %v3336_v47  ;;  %v3338_v50 = vpop.eup %3337 }
0x145b   :  { %2301 = vrot.lane.b32.xlu1 %v3334_v45, %s3423_s1  ;;  %v2295_v51 = vadd.f32 1.0, %v3338_v50 }
0x145c   :  { %3339 = vrcp.f32 %v2192_v48 }
0x145d   :  { %3341 = vrcp.f32 %v2295_v51 }
0x1466   :  { %v3340_v52 = vpop.eup %3339 }
0x1467   :  { %v3342_v55 = vpop.eup %3341  ;;  %v2196_v61 = vmul.f32 %v3340_v52, %v3868_v14 }
0x1468   :  { %v2299_v8 = vmul.f32 %v3342_v55, %v3872_v30 }
0x14c9   :  { %v2199_v23 = vpop.permute.xlu1 %2198 }
0x14ca   :  { %v2201_v53 = vmul.f32 %v3340_v52, %v2199_v23 }
0x14cc   :  { %2203 = vrot.lane.b32.xlu0 %v2201_v53, %s3424_s24 }
0x14cd   :  { %v2302_v57 = vpop.permute.xlu1 %2301 }
0x14ce   :  { %v2304_v59 = vmul.f32 %v3342_v55, %v2302_v57 }
0x14d0   :  { %2306 = vrot.lane.b32.xlu1 %v2304_v59, %s3424_s24 }
0x153e   :  { %v2204_v4 = vpop.permute.xlu0 %2203 }
0x153f   :  { %v2206_v6 = vadd.f32 %v2204_v4, %v2196_v61 }
0x1541   :  { %3343 = vtanh.f32 %v2206_v6 }
0x1542   :  { %v2307_v9 = vpop.permute.xlu1 %2306 }
0x1543   :  { %v2309_v13 = vadd.f32 %v2307_v9, %v2299_v8 }
0x1545   :  { %3345 = vtanh.f32 %v2309_v13 }
0x154b   :  { %v3344_v28 = vpop.eup %3343 }
0x154c   :  { %2209 = vrot.lane.b32.xlu0 %v3344_v28, %s3423_s1 }
0x154f   :  { %v3346_v56 = vpop.eup %3345 }
0x1550   :  { %2312 = vrot.lane.b32.xlu1 %v3346_v56, %s3423_s1 }
0x15be   :  { %v2210_v15 = vpop.permute.xlu0 %2209 }
0x15bf   :  { %v2212_v16 = vmul.f32 %v3340_v52, %v2210_v15 }
0x15c1   :  { %2214 = vrot.lane.b32.xlu0 %v2212_v16, %s3424_s24 }
0x15c2   :  { %v2313_v17 = vpop.permute.xlu1 %2312 }
0x15c3   :  { %v2315_v5 = vmul.f32 %v3342_v55, %v2313_v17 }
0x15c5   :  { %2389 = vrot.lane.b32.xlu1 %v2315_v5, %s3424_s24 }
0x1633   :  { %v2215_v20 = vpop.permute.xlu0 %2214 }
0x1634   :  { %2218 = vst.msk [vmem:[#allocation3 + $0x30] sm:$0xff] %vm295_vm1, %v2215_v20  ;;  %3027 = vmatmul.mubr.msk.f32.vlgmr.msra.gmra.mrb[22].mxu0 %vm295_vm1, %v2215_v20 }
0x1637   :  { %v2390_v21 = vpop.permute.xlu1 %2389 }
0x1638   :  { %3038 = vmatmul.mubr.msk.f32.vlgmr.msra.gmra.mrb[22].mxu1 %vm295_vm1, %v2390_v21 }
0x163b   :  { %v2500_v45 = vld [vmem:[#allocation3 + $0x30] sm:$0xff] }
0x163c   :  { %v2515_v46 = vmul.f32 %v3931_v54, %v2500_v45 }
0x163e   :  { %v2535_v47 = vsel %vm295_vm1, %v2515_v46, 0.0 }
0x1707   :  { %v2384_v25 = vpop.f32.mrb[22].mxu0 }
0x1708   :  { %v3028_v14 = vpop.f32.mrb[23].mxu0 }
0x170b   :  { %v2459_v60 = vpop.f32.mrb[22].mxu1 }
0x170c   :  { %v2460_v29 = vadd.f32 %v2459_v60, %v2384_v25  ;;  %v3039_v30 = vpop.f32.mrb[23].mxu1 }
0x170e   :  { %v2463_v19 = vadd.f32 %v3388_v18, %v2460_v29 }
0x1710   :  { %3347 = vtanh.f32 %v2463_v19  ;;  %v2646_v49 = vmul.f32 -1.442695, %v2463_v19 }
0x1712   :  { %3349 = vpow2.f32 %v2646_v49 }
0x171a   :  { %v3348_v31 = vpop.eup %3347 }
0x171b   :  { %2473 = vrot.lane.b32.xlu0 %v3348_v31, %s3423_s1 }
0x171c   :  { %v3350_v24 = vpop.eup %3349 }
0x171d   :  { %v2467_v33 = vadd.f32 1.0, %v3350_v24 }
0x171f   :  { %3351 = vrcp.f32 %v2467_v33 }
0x1729   :  { %v3352_v26 = vpop.eup %3351 }
0x172a   :  { %v2471_v2 = vmul.f32 %v3352_v26, %v2206_v6 }
0x178d   :  { %v2474_v34 = vpop.permute.xlu0 %2473 }
0x178e   :  { %v2476_v35 = vmul.f32 %v3352_v26, %v2474_v34 }
0x1790   :  { %2478 = vrot.lane.b32.xlu1 %v2476_v35, %s3424_s24 }
0x1802   :  { %v2479_v3 = vpop.permute.xlu1 %2478 }
0x1803   :  { %v2481_v7 = vadd.f32 %v2479_v3, %v2471_v2 }
0x1805   :  { %3353 = vtanh.f32 %v2481_v7 }
0x180f   :  { %v3354_v10 = vpop.eup %3353 }
0x1810   :  { %2484 = vrot.lane.b32.xlu0 %v3354_v10, %s3423_s1 }
0x182f   :  { %2518 = vadd.xlane.f32.xlu0 %v2517_v62 }
0x1833   :  { %2524 = vadd.xlane.f32.xlu0 %v2523_v0 }
0x1837   :  { %2527 = vadd.xlane.f32.xlu0 %v2526_v40 }
0x183b   :  { %2533 = vadd.xlane.f32.xlu0 %v2532_v41 }
0x1882   :  { %v2485_v42 = vpop.permute.xlu0 %2484 }
0x1883   :  { %v2487_v18 = vmul.f32 %v3352_v26, %v2485_v42 }
0x1885   :  { %2489 = vrot.lane.b32.xlu1 %v2487_v18, %s3424_s24 }
0x18a9   :  { %2521 = vadd.xlane.f32.xlu1 %v2520_v44 }
0x18ad   :  { %2530 = vadd.xlane.f32.xlu1 %v2529_v32 }
0x18b1   :  { %2536 = vadd.xlane.f32.xlu1 %v2535_v47 }
0x18bc   :  { %v2519_v48 = vpop.xlane.xlu0 %2518 }
0x18bd   :  { %v2648_v50 = vmul.f32 -1.442695, %v2519_v48 }
0x18bf   :  { %3355 = vpow2.f32 %v2648_v50 }
0x18c0   :  { %v2525_v51 = vpop.xlane.xlu0 %2524 }
0x18c1   :  { %v2650_v52 = vmul.f32 -1.442695, %v2525_v51 }
0x18c3   :  { %3357 = vpow2.f32 %v2650_v52 }
0x18c4   :  { %v2528_v23 = vpop.xlane.xlu0 %2527 }
0x18c5   :  { %v2651_v53 = vmul.f32 -1.442695, %v2528_v23 }
0x18c7   :  { %3359 = vpow2.f32 %v2651_v53 }
0x18c8   :  { %v2534_v55 = vpop.xlane.xlu0 %2533 }
0x18c9   :  { %v3356_v57 = vpop.eup %3355  ;;  %v2653_v59 = vmul.f32 -1.442695, %v2534_v55 }
0x18ca   :  { %v2565_v61 = vadd.f32 1.0, %v3356_v57 }
0x18cb   :  { %3361 = vpow2.f32 %v2653_v59 }
0x18cc   :  { %3363 = vrcp.f32 %v2565_v61 }
0x18cd   :  { %v3358_v4 = vpop.eup %3357 }
0x18ce   :  { %v2567_v6 = vadd.f32 1.0, %v3358_v4 }
0x18d0   :  { %3365 = vrcp.f32 %v2567_v6 }
0x18d1   :  { %v3360_v8 = vpop.eup %3359 }
0x18d2   :  { %v2568_v9 = vadd.f32 1.0, %v3360_v8 }
0x18d4   :  { %3367 = vrcp.f32 %v2568_v9 }
0x18d5   :  { %v3362_v13 = vpop.eup %3361 }
0x18d6   :  { %v3364_v28 = vpop.eup %3363  ;;  %v2570_v56 = vadd.f32 1.0, %v3362_v13 }
0x18d7   :  { %2590 = vst.msk [vmem:[%s3989_s6] sm:$0xff] %vm2589_vm2, %v3364_v28 }
0x18d8   :  { %3369 = vrcp.f32 %v2570_v56 }
0x18da   :  { %v3366_v15 = vpop.eup %3365 }
0x18db   :  { %2592 = vst.msk [vmem:[%s3989_s6 + $0x10] sm:$0xff] %vm2589_vm2, %v3366_v15 }
0x18de   :  { %v3368_v16 = vpop.eup %3367 }
0x18df   :  { %2593 = vst.msk [vmem:[%s3989_s6 + $0x18] sm:$0xff] %vm2589_vm2, %v3368_v16 }
0x18e2   :  { %v3370_v17 = vpop.eup %3369 }
0x18e3   :  { %2595 = vst.msk [vmem:[%s3989_s6 + $0x28] sm:$0xff] %vm2589_vm2, %v3370_v17 }
0x18f7   :  { %v2490_v5 = vpop.permute.xlu1 %2489 }
0x18f8   :  { %2493 = vst.msk [vmem:[#allocation3 + $0x38] sm:$0xff] %vm295_vm1, %v2490_v5 }
0x18ff   :  { %v2501_v20 = vld [vmem:[#allocation3 + $0x38] sm:$0xff] }
0x1900   :  { %v2516_v21 = vmul.f32 %v3931_v54, %v2501_v20 }
0x1902   :  { %v2538_v25 = vsel %vm295_vm1, %v2516_v21, 0.0 }
0x1903   :  { %2539 = vadd.xlane.f32.xlu0 %v2538_v25 }
0x1936   :  { %v2522_v14 = vpop.xlane.xlu1 %2521 }
0x1937   :  { %v2649_v60 = vmul.f32 -1.442695, %v2522_v14 }
0x1939   :  { %3371 = vpow2.f32 %v2649_v60 }
0x193a   :  { %v2531_v29 = vpop.xlane.xlu1 %2530 }
0x193b   :  { %v2652_v30 = vmul.f32 -1.442695, %v2531_v29 }
0x193d   :  { %3373 = vpow2.f32 %v2652_v30 }
0x193e   :  { %v2537_v19 = vpop.xlane.xlu1 %2536 }
0x193f   :  { %v2654_v31 = vmul.f32 -1.442695, %v2537_v19 }
0x1941   :  { %3375 = vpow2.f32 %v2654_v31 }
0x1943   :  { %v3372_v49 = vpop.eup %3371 }
0x1944   :  { %v2566_v24 = vadd.f32 1.0, %v3372_v49 }
0x1946   :  { %3377 = vrcp.f32 %v2566_v24 }
0x1947   :  { %v3374_v33 = vpop.eup %3373 }
0x1948   :  { %v2569_v26 = vadd.f32 1.0, %v3374_v33 }
0x194a   :  { %3379 = vrcp.f32 %v2569_v26 }
0x194b   :  { %v3376_v34 = vpop.eup %3375 }
0x194c   :  { %v2571_v35 = vadd.f32 1.0, %v3376_v34 }
0x194e   :  { %3381 = vrcp.f32 %v2571_v35 }
0x1950   :  { %v3378_v2 = vpop.eup %3377 }
0x1951   :  { %2591 = vst.msk [vmem:[%s3989_s6 + $0x8] sm:$0xff] %vm2589_vm2, %v3378_v2 }
0x1954   :  { %v3380_v3 = vpop.eup %3379 }
0x1955   :  { %2594 = vst.msk [vmem:[%s3989_s6 + $0x20] sm:$0xff] %vm2589_vm2, %v3380_v3 }
0x1958   :  { %v3382_v7 = vpop.eup %3381 }
0x1959   :  { %2596 = vst.msk [vmem:[%s3989_s6 + $0x30] sm:$0xff] %vm2589_vm2, %v3382_v7 }
0x1990   :  { %v2540_v10 = vpop.xlane.xlu0 %2539 }
0x1991   :  { %v2655_v12 = vmul.f32 -1.442695, %v2540_v10 }
0x1993   :  { %3383 = vpow2.f32 %v2655_v12 }
0x199d   :  { %v3384_v54 = vpop.eup %3383 }
0x199e   :  { %v2572_v11 = vadd.f32 1.0, %v3384_v54 }
0x19a0   :  { %3385 = vrcp.f32 %v2572_v11 }
0x19aa   :  { %v3386_v36 = vpop.eup %3385 }
0x19ab   :  { %2597 = vst.msk [vmem:[%s3989_s6 + $0x38] sm:$0xff] %vm2589_vm2, %v3386_v36 }
0x19ac   :  { %2602 = vsyncpa [#allocation5], 1 }

</bundles_post_ra>
